<compile_context>
chip_gen: v7x
topology: tpu7x:2x2x1
jax: 0.10.0
libtpu: 0.0.40
codegen_flags: <defaults>
</compile_context>

<pallas_src>
import functools

import jax
import jax.numpy as jnp
from jax.experimental import pallas as pl
from jax.experimental.pallas import tpu as pltpu

BN_EPS = 1e-5
LANES = 128
BF16_SUBLANES = 16          # packed-sublane granularity for bf16 row slices
TARGET_TILE_ROWS = 2048     # ~1 MiB f32 output tile at cout_p = 128


def _round_up(x, m):
    return (x + m - 1) // m * m


def _cdiv(a, b):
    return -(-a // b)


def _conv_tile(x_ref, w_ref, *, tile_m, wp, kh):
    """Conv over one flattened row tile as kh accumulated MXU matmuls.

    x_ref: (1, r_stack, k_p) bf16 -- whole kw-stacked padded image, resident across row tiles;
           row index r = oh*wp + ow, channel index k = dw*cin + c.
    w_ref: (kh, k_p, cout_p) bf16
    returns (tile_m, cout_p) f32 conv outputs for flattened rows [t*tile_m, (t+1)*tile_m);
    rows whose column >= w_out (or row >= m_out) are alignment junk (masked / cropped later).
    """
    t = pl.program_id(1)
    acc = None
    for dh in range(kh):
        start = pl.multiple_of(t * tile_m + dh * wp, BF16_SUBLANES)
        xs = x_ref[0, pl.ds(start, tile_m), :]
        p = jnp.dot(xs, w_ref[dh], preferred_element_type=jnp.float32)
        acc = p if acc is None else acc + p
    return acc


def _stats_kernel(x_ref, w_ref, stats_ref, *, tile_m, wp, kh, w_out, m_out):
    # Pass 1: conv tile + per-(image, tile) partial BN statistics (sum and sum of squares).
    y = _conv_tile(x_ref, w_ref, tile_m=tile_m, wp=wp, kh=kh)
    t = pl.program_id(1)
    row = t * tile_m + jax.lax.broadcasted_iota(jnp.int32, (tile_m, 1), 0)
    valid = (row % wp < w_out) & (row < m_out)           # in-kernel mask (no mask input DMA)
    ym = jnp.where(valid, y, 0.0)
    stats_ref[0, 0, 0:1, :] = jnp.sum(ym, axis=0, keepdims=True)       # sum(y)
    stats_ref[0, 0, 1:2, :] = jnp.sum(ym * y, axis=0, keepdims=True)   # sum(y^2)


def _apply_kernel(x_ref, w_ref, shift_ref, o_ref, *, tile_m, wp, kh):
    # Pass 2: conv tile with BN-scale-folded weights, add shift, ReLU, lane-dense f32 store.
    y = _conv_tile(x_ref, w_ref, tile_m=tile_m, wp=wp, kh=kh)
    o_ref[0, :, :] = jnp.maximum(y + shift_ref[...], 0.0)


@functools.partial(jax.jit, static_argnames=("padding",))
def conv_bn_relu2d(x_nchw, weight_oihw, gamma, beta, padding=1):
    """Forward pass of ConvBnRelu2d.

    x_nchw:      (N, Cin, H, W)      float32
    weight_oihw: (Cout, Cin, KH, KW) float32 (PyTorch layout)
    gamma, beta: (Cout,)             float32
    returns:     (N, Cout, Hout, Wout) float32
    """
    n, cin, h, w = x_nchw.shape
    cout, _, kh, kw = weight_oihw.shape

    h_out = h + 2 * padding - kh + 1
    w_out = w + 2 * padding - kw + 1
    wp = _round_up(w + 2 * padding, BF16_SUBLANES)       # padded width, bf16 sublane aligned
    k_p = _round_up(kw * cin, BF16_SUBLANES)             # fattened contraction dim
    cout_p = _round_up(cout, LANES)                      # lane-dense output channels
    m_out = h_out * wp                                   # valid flattened output rows per image

    # intra-image row tiling (tile_m = whole padded rows, multiple of wp -> multiple of 16)
    rows_per_tile = max(1, min(h_out, TARGET_TILE_ROWS // wp))
    tile_m = rows_per_tile * wp
    m_tiles = _cdiv(h_out, rows_per_tile)
    m_pad = m_tiles * tile_m
    r_stack = m_pad + (kh - 1) * wp                      # rows of the stacked input we index into

    # ---- glue: NCHW -> NHWC, single spatial pad, flatten, kw-stack taps into channels, bf16 ----
    rows_needed = r_stack + kw - 1
    h_rows = _cdiv(rows_needed, wp)                      # padded-image rows to materialize
    x_nhwc = jnp.transpose(x_nchw, (0, 2, 3, 1)).astype(jnp.float32)
    x_padded = jnp.pad(x_nhwc, ((0, 0), (padding, h_rows - h - padding),
                                (padding, wp - w - padding), (0, 0)))
    x_flat = x_padded.reshape(n, h_rows * wp, cin)
    x_stack = jnp.concatenate([x_flat[:, dw:dw + r_stack, :] for dw in range(kw)], axis=-1)
    x_stack = jnp.pad(x_stack, ((0, 0), (0, 0), (0, k_p - kw * cin))).astype(jnp.bfloat16)

    # weights: OIHW -> (kh, kw*cin, cout) matching the kw-stacked channel order, pad, bf16
    w_t = jnp.transpose(weight_oihw.astype(jnp.float32), (2, 3, 1, 0)).reshape(kh, kw * cin, cout)
    w_t = jnp.pad(w_t, ((0, 0), (0, k_p - kw * cin), (0, cout_p - cout)))
    w1 = w_t.astype(jnp.bfloat16)

    gamma_p = jnp.pad(gamma.astype(jnp.float32), (0, cout_p - cout))
    beta_p = jnp.pad(beta.astype(jnp.float32), (0, cout_p - cout))

    grid = (n, m_tiles)
    dim_sem = ("parallel", "parallel")                   # independent tiles; megacore splits both
    x_spec = pl.BlockSpec((1, r_stack, k_p), lambda i, t: (i, 0, 0))   # resident across row tiles
    w_spec = pl.BlockSpec((kh, k_p, cout_p), lambda i, t: (0, 0, 0))
    conv_flops = 2 * n * m_pad * kh * k_p * cout_p
    x_bytes = x_stack.size * 2
    w_bytes = w1.size * 2

    # ---- pass 1: conv -> per-(image, tile) partial sum / sum-of-squares ----
    stats = pl.pallas_call(
        functools.partial(_stats_kernel, tile_m=tile_m, wp=wp, kh=kh, w_out=w_out, m_out=m_out),
        out_shape=jax.ShapeDtypeStruct((n, m_tiles, 2, cout_p), jnp.float32),
        grid=grid,
        in_specs=[x_spec, w_spec],
        out_specs=pl.BlockSpec((1, 1, 2, cout_p), lambda i, t: (i, t, 0, 0)),
        compiler_params=pltpu.CompilerParams(dimension_semantics=dim_sem),
        cost_estimate=pl.CostEstimate(
            flops=conv_flops, transcendentals=0,
            bytes_accessed=x_bytes + w_bytes + n * m_tiles * 2 * cout_p * 4),
    )(x_stack, w1)

    # ---- tiny combine: fold BatchNorm (training-mode batch stats) into weights/shift ----
    count = float(n * h_out * w_out)
    tot = jnp.sum(stats, axis=(0, 1))                    # (2, cout_p)
    mean = tot[0] / count
    var = jnp.maximum(tot[1] / count - mean * mean, 0.0) # biased variance
    inv_std = jax.lax.rsqrt(var + BN_EPS)
    scale = gamma_p * inv_std                            # (cout_p,)
    shift = (beta_p - mean * scale).reshape(1, cout_p)
    w2 = (w_t * scale.reshape(1, 1, cout_p)).astype(jnp.bfloat16)   # BN scale folded into weights

    # ---- pass 2: recompute conv with folded weights, add shift, ReLU, lane-dense output ----
    out_flat = pl.pallas_call(
        functools.partial(_apply_kernel, tile_m=tile_m, wp=wp, kh=kh),
        out_shape=jax.ShapeDtypeStruct((n, m_pad, cout_p), jnp.float32),
        grid=grid,
        in_specs=[x_spec, w_spec, pl.BlockSpec((1, cout_p), lambda i, t: (0, 0))],
        out_specs=pl.BlockSpec((1, tile_m, cout_p), lambda i, t: (i, t, 0)),
        compiler_params=pltpu.CompilerParams(dimension_semantics=dim_sem),
        cost_estimate=pl.CostEstimate(
            flops=conv_flops, transcendentals=0,
            bytes_accessed=x_bytes + w_bytes + cout_p * 4 + n * m_pad * cout_p * 4),
    )(x_stack, w2, shift)

    # ---- glue: strip alignment/channel padding, back to NCHW ----
    out = out_flat[:, :m_out, :].reshape(n, h_out, wp, cout_p)[:, :, :w_out, :cout]
    return jnp.transpose(out, (0, 3, 1, 2))


def reference_conv_bn_relu(x_nchw, weight_oihw, gamma, beta, padding=1):
    """Pure-JAX f32 reference matching PyTorch Conv2d(bias=False)+BatchNorm2d(train)+ReLU."""
    y = jax.lax.conv_general_dilated(
        x_nchw, weight_oihw, window_strides=(1, 1),
        padding=((padding, padding), (padding, padding)),
        dimension_numbers=("NCHW", "OIHW", "NCHW"))
    mean = jnp.mean(y, axis=(0, 2, 3), keepdims=True)
    var = jnp.mean((y - mean) ** 2, axis=(0, 2, 3), keepdims=True)  # biased
    y = (y - mean) / jnp.sqrt(var + BN_EPS)
    y = y * gamma.reshape(1, -1, 1, 1) + beta.reshape(1, -1, 1, 1)
    return jnp.maximum(y, 0.0)


if __name__ == "__main__":
    key = jax.random.PRNGKey(0)
    kx, kw_, kg, kb = jax.random.split(key, 4)

    N, CIN, COUT, H, W = 2, 4, 8, 16, 16
    x = jax.random.normal(kx, (N, CIN, H, W), dtype=jnp.float32)
    fan_in = CIN * 3 * 3
    weight = jax.random.normal(kw_, (COUT, CIN, 3, 3), dtype=jnp.float32) / jnp.sqrt(fan_in)
    gamma = 1.0 + 0.1 * jax.random.normal(kg, (COUT,), dtype=jnp.float32)
    beta = 0.1 * jax.random.normal(kb, (COUT,), dtype=jnp.float32)

    out = conv_bn_relu2d(x, weight, gamma, beta, padding=1)
    out = jax.block_until_ready(out)

    ref = reference_conv_bn_relu(x, weight, gamma, beta, padding=1)
    assert out.shape == (N, COUT, H, W), out.shape
    # Tolerance relaxed vs the f32 reference because the conv runs with bf16 MXU operands.
    assert jnp.allclose(out, ref, atol=5e-2, rtol=5e-2), float(jnp.max(jnp.abs(out - ref)))

    print("KERNEL_OK")
</pallas_src>

<mosaic_0001>
module attributes {stable_mosaic.version = 11 : i64} {
  func.func @_stats_kernel(%arg0: i32, %arg1: i32, %arg2: memref<1x576x16xbf16, #tpu.memory_space<vmem>>, %arg3: memref<3x16x128xbf16, #tpu.memory_space<vmem>>, %arg4: memref<1x1x2x128xf32, #tpu.memory_space<vmem>>) attributes {dimension_semantics = [#tpu.dimension_semantics<parallel>, #tpu.dimension_semantics<parallel>], iteration_bounds = array<i64: 2, 1>, scalar_prefetch = 0 : i64, scratch_operands = 0 : i64, tpu.core_type = #tpu.core_type<tc>, window_params = [{transform_indices = @transform_0, window_bounds = array<i64: 1, 576, 16>}, {pipeline_mode = #tpu.pipeline_mode<synchronous>, transform_indices = @transform_1, window_bounds = array<i64: 3, 16, 128>}, {transform_indices = @transform_2, window_bounds = array<i64: 1, 1, 2, 128>}]} {
    %c512_i32 = arith.constant 512 : i32
    %0 = arith.muli %arg1, %c512_i32 : i32
    %c0_i32 = arith.constant 0 : i32
    %1 = arith.addi %0, %c0_i32 : i32
    %2 = tpu.assume_multiple %1, 16 : i32
    %c0 = arith.constant 0 : index
    %3 = arith.index_cast %2 : i32 to index
    %c0_0 = arith.constant 0 : index
    %4 = vector.load %arg2[%c0, %3, %c0_0] : memref<1x576x16xbf16, #tpu.memory_space<vmem>>, vector<1x512x16xbf16>
    %5 = vector.shape_cast %4 : vector<1x512x16xbf16> to vector<512x16xbf16>
    %c0_1 = arith.constant 0 : index
    %c0_2 = arith.constant 0 : index
    %c0_3 = arith.constant 0 : index
    %6 = vector.load %arg3[%c0_1, %c0_2, %c0_3] : memref<3x16x128xbf16, #tpu.memory_space<vmem>>, vector<1x16x128xbf16>
    %7 = vector.shape_cast %6 : vector<1x16x128xbf16> to vector<16x128xbf16>
    %cst = arith.constant dense<0.000000e+00> : vector<512x128xf32>
    %8 = tpu.matmul %5, %7, %cst {dimension_numbers = #tpu.dot_dimension_numbers<[1], [0], [0], [1], [0, 0, 1, 1], [], []>} : vector<512x16xbf16>, vector<16x128xbf16>, vector<512x128xf32> -> vector<512x128xf32>
    %c512_i32_4 = arith.constant 512 : i32
    %9 = arith.muli %arg1, %c512_i32_4 : i32
    %c32_i32 = arith.constant 32 : i32
    %10 = arith.addi %9, %c32_i32 : i32
    %11 = tpu.assume_multiple %10, 16 : i32
    %c0_5 = arith.constant 0 : index
    %12 = arith.index_cast %11 : i32 to index
    %c0_6 = arith.constant 0 : index
    %13 = vector.load %arg2[%c0_5, %12, %c0_6] : memref<1x576x16xbf16, #tpu.memory_space<vmem>>, vector<1x512x16xbf16>
    %14 = vector.shape_cast %13 : vector<1x512x16xbf16> to vector<512x16xbf16>
    %c1 = arith.constant 1 : index
    %c0_7 = arith.constant 0 : index
    %c0_8 = arith.constant 0 : index
    %15 = vector.load %arg3[%c1, %c0_7, %c0_8] : memref<3x16x128xbf16, #tpu.memory_space<vmem>>, vector<1x16x128xbf16>
    %16 = vector.shape_cast %15 : vector<1x16x128xbf16> to vector<16x128xbf16>
    %cst_9 = arith.constant dense<0.000000e+00> : vector<512x128xf32>
    %17 = tpu.matmul %14, %16, %cst_9 {dimension_numbers = #tpu.dot_dimension_numbers<[1], [0], [0], [1], [0, 0, 1, 1], [], []>} : vector<512x16xbf16>, vector<16x128xbf16>, vector<512x128xf32> -> vector<512x128xf32>
    %18 = arith.addf %8, %17 : vector<512x128xf32>
    %c512_i32_10 = arith.constant 512 : i32
    %19 = arith.muli %arg1, %c512_i32_10 : i32
    %c64_i32 = arith.constant 64 : i32
    %20 = arith.addi %19, %c64_i32 : i32
    %21 = tpu.assume_multiple %20, 16 : i32
    %c0_11 = arith.constant 0 : index
    %22 = arith.index_cast %21 : i32 to index
    %c0_12 = arith.constant 0 : index
    %23 = vector.load %arg2[%c0_11, %22, %c0_12] : memref<1x576x16xbf16, #tpu.memory_space<vmem>>, vector<1x512x16xbf16>
    %24 = vector.shape_cast %23 : vector<1x512x16xbf16> to vector<512x16xbf16>
    %c2 = arith.constant 2 : index
    %c0_13 = arith.constant 0 : index
    %c0_14 = arith.constant 0 : index
    %25 = vector.load %arg3[%c2, %c0_13, %c0_14] : memref<3x16x128xbf16, #tpu.memory_space<vmem>>, vector<1x16x128xbf16>
    %26 = vector.shape_cast %25 : vector<1x16x128xbf16> to vector<16x128xbf16>
    %cst_15 = arith.constant dense<0.000000e+00> : vector<512x128xf32>
    %27 = tpu.matmul %24, %26, %cst_15 {dimension_numbers = #tpu.dot_dimension_numbers<[1], [0], [0], [1], [0, 0, 1, 1], [], []>} : vector<512x16xbf16>, vector<16x128xbf16>, vector<512x128xf32> -> vector<512x128xf32>
    %28 = arith.addf %18, %27 : vector<512x128xf32>
    %c512_i32_16 = arith.constant 512 : i32
    %29 = arith.muli %arg1, %c512_i32_16 : i32
    %30 = tpu.iota {dimensions = array<i32: 0>} : vector<512x1xi32>
    %31 = vector.broadcast %29 : i32 to vector<512x1xi32>
    %32 = arith.addi %31, %30 : vector<512x1xi32>
    %c32_i32_17 = arith.constant 32 : i32
    %c0_i32_18 = arith.constant 0 : i32
    %33 = arith.cmpi eq, %c32_i32_17, %c0_i32_18 : i32
    %c1_i32 = arith.constant 1 : i32
    %34 = arith.select %33, %c1_i32, %c32_i32_17 : i32
    %35 = vector.broadcast %34 : i32 to vector<512x1xi32>
    %36 = arith.remsi %32, %35 : vector<512x1xi32>
    %c0_i32_19 = arith.constant 0 : i32
    %37 = vector.broadcast %c0_i32_19 : i32 to vector<512x1xi32>
    %38 = arith.cmpi ne, %36, %37 : vector<512x1xi32>
    %c0_i32_20 = arith.constant 0 : i32
    %39 = vector.broadcast %c0_i32_20 : i32 to vector<512x1xi32>
    %40 = arith.cmpi slt, %36, %39 : vector<512x1xi32>
    %c0_i32_21 = arith.constant 0 : i32
    %41 = arith.cmpi slt, %34, %c0_i32_21 : i32
    %42 = vector.broadcast %41 : i1 to vector<512x1xi1>
    %43 = vector.broadcast %42 : vector<512x1xi1> to vector<512x1xi1>
    %44 = arith.xori %40, %43 : vector<512x1xi1>
    %45 = arith.andi %44, %38 : vector<512x1xi1>
    %46 = vector.broadcast %34 : i32 to vector<512x1xi32>
    %47 = arith.addi %36, %46 : vector<512x1xi32>
    %48 = arith.select %45, %47, %36 : vector<512x1xi1>, vector<512x1xi32>
    %c16_i32 = arith.constant 16 : i32
    %49 = vector.broadcast %c16_i32 : i32 to vector<512x1xi32>
    %50 = arith.cmpi slt, %48, %49 : vector<512x1xi32>
    %c512_i32_22 = arith.constant 512 : i32
    %51 = vector.broadcast %c512_i32_22 : i32 to vector<512x1xi32>
    %52 = arith.cmpi slt, %32, %51 : vector<512x1xi32>
    %53 = arith.andi %50, %52 : vector<512x1xi1>
    %cst_23 = arith.constant 0.000000e+00 : f32
    %54 = vector.shape_cast %53 : vector<512x1xi1> to vector<512x1xi1>
    %55 = vector.broadcast %54 : vector<512x1xi1> to vector<512x128xi1>
    %56 = vector.broadcast %cst_23 : f32 to vector<512x128xf32>
    %57 = arith.select %55, %28, %56 : vector<512x128xi1>, vector<512x128xf32>
    %cst_24 = arith.constant dense<0.000000e+00> : vector<128xf32>
    %58 = vector.multi_reduction <add>, %57, %cst_24 [0] : vector<512x128xf32> to vector<128xf32>
    %59 = vector.shape_cast %58 : vector<128xf32> to vector<1x128xf32>
    %c0_25 = arith.constant 0 : index
    %c0_26 = arith.constant 0 : index
    %c0_27 = arith.constant 0 : index
    %c0_28 = arith.constant 0 : index
    %60 = vector.load %arg4[%c0_25, %c0_26, %c0_27, %c0_28] : memref<1x1x2x128xf32, #tpu.memory_space<vmem>>, vector<1x1x1x128xf32>
    %61 = vector.shape_cast %60 : vector<1x1x1x128xf32> to vector<1x128xf32>
    %62 = vector.shape_cast %59 : vector<1x128xf32> to vector<1x1x1x128xf32>
    tpu.vector_store %arg4[%c0_25, %c0_26, %c0_27, %c0_28], %62 {strides = array<i32>} : memref<1x1x2x128xf32, #tpu.memory_space<vmem>>, vector<1x1x1x128xf32>,
    %63 = arith.mulf %57, %28 : vector<512x128xf32>
    %cst_29 = arith.constant dense<0.000000e+00> : vector<128xf32>
    %64 = vector.multi_reduction <add>, %63, %cst_29 [0] : vector<512x128xf32> to vector<128xf32>
    %65 = vector.shape_cast %64 : vector<128xf32> to vector<1x128xf32>
    %c0_30 = arith.constant 0 : index
    %c0_31 = arith.constant 0 : index
    %c1_32 = arith.constant 1 : index
    %c0_33 = arith.constant 0 : index
    %66 = vector.load %arg4[%c0_30, %c0_31, %c1_32, %c0_33] : memref<1x1x2x128xf32, #tpu.memory_space<vmem>>, vector<1x1x1x128xf32>
    %67 = vector.shape_cast %66 : vector<1x1x1x128xf32> to vector<1x128xf32>
    %68 = vector.shape_cast %65 : vector<1x128xf32> to vector<1x1x1x128xf32>
    tpu.vector_store %arg4[%c0_30, %c0_31, %c1_32, %c0_33], %68 {strides = array<i32>} : memref<1x1x2x128xf32, #tpu.memory_space<vmem>>, vector<1x1x1x128xf32>,
    return
  }
  func.func @transform_0(%arg0: i32, %arg1: i32) -> (i32, i32, i32) {
    %c0_i32 = arith.constant 0 : i32
    %c0_i32_0 = arith.constant 0 : i32
    %c0_i32_1 = arith.constant 0 : i32
    return %arg0, %c0_i32, %c0_i32_0 : i32, i32, i32
  }
  func.func @transform_1(%arg0: i32, %arg1: i32) -> (i32, i32, i32) {
    %c0_i32 = arith.constant 0 : i32
    %c0_i32_0 = arith.constant 0 : i32
    %c0_i32_1 = arith.constant 0 : i32
    %c0_i32_2 = arith.constant 0 : i32
    return %c0_i32, %c0_i32_0, %c0_i32_1 : i32, i32, i32
  }
  func.func @transform_2(%arg0: i32, %arg1: i32) -> (i32, i32, i32, i32) {
    %c0_i32 = arith.constant 0 : i32
    %c0_i32_0 = arith.constant 0 : i32
    %c0_i32_1 = arith.constant 0 : i32
    return %arg0, %arg1, %c0_i32, %c0_i32_0 : i32, i32, i32, i32
  }
}

module attributes {stable_mosaic.version = 11 : i64} {
  func.func @_apply_kernel(%arg0: i32, %arg1: i32, %arg2: memref<1x576x16xbf16, #tpu.memory_space<vmem>>, %arg3: memref<3x16x128xbf16, #tpu.memory_space<vmem>>, %arg4: memref<1x128xf32, #tpu.memory_space<vmem>>, %arg5: memref<1x512x128xf32, #tpu.memory_space<vmem>>) attributes {dimension_semantics = [#tpu.dimension_semantics<parallel>, #tpu.dimension_semantics<parallel>], iteration_bounds = array<i64: 2, 1>, scalar_prefetch = 0 : i64, scratch_operands = 0 : i64, tpu.core_type = #tpu.core_type<tc>, window_params = [{transform_indices = @transform_0, window_bounds = array<i64: 1, 576, 16>}, {pipeline_mode = #tpu.pipeline_mode<synchronous>, transform_indices = @transform_1, window_bounds = array<i64: 3, 16, 128>}, {pipeline_mode = #tpu.pipeline_mode<synchronous>, transform_indices = @transform_2, window_bounds = array<i64: 1, 128>}, {transform_indices = @transform_3, window_bounds = array<i64: 1, 512, 128>}]} {
    %c512_i32 = arith.constant 512 : i32
    %0 = arith.muli %arg1, %c512_i32 : i32
    %c0_i32 = arith.constant 0 : i32
    %1 = arith.addi %0, %c0_i32 : i32
    %2 = tpu.assume_multiple %1, 16 : i32
    %c0 = arith.constant 0 : index
    %3 = arith.index_cast %2 : i32 to index
    %c0_0 = arith.constant 0 : index
    %4 = vector.load %arg2[%c0, %3, %c0_0] : memref<1x576x16xbf16, #tpu.memory_space<vmem>>, vector<1x512x16xbf16>
    %5 = vector.shape_cast %4 : vector<1x512x16xbf16> to vector<512x16xbf16>
    %c0_1 = arith.constant 0 : index
    %c0_2 = arith.constant 0 : index
    %c0_3 = arith.constant 0 : index
    %6 = vector.load %arg3[%c0_1, %c0_2, %c0_3] : memref<3x16x128xbf16, #tpu.memory_space<vmem>>, vector<1x16x128xbf16>
    %7 = vector.shape_cast %6 : vector<1x16x128xbf16> to vector<16x128xbf16>
    %cst = arith.constant dense<0.000000e+00> : vector<512x128xf32>
    %8 = tpu.matmul %5, %7, %cst {dimension_numbers = #tpu.dot_dimension_numbers<[1], [0], [0], [1], [0, 0, 1, 1], [], []>} : vector<512x16xbf16>, vector<16x128xbf16>, vector<512x128xf32> -> vector<512x128xf32>
    %c512_i32_4 = arith.constant 512 : i32
    %9 = arith.muli %arg1, %c512_i32_4 : i32
    %c32_i32 = arith.constant 32 : i32
    %10 = arith.addi %9, %c32_i32 : i32
    %11 = tpu.assume_multiple %10, 16 : i32
    %c0_5 = arith.constant 0 : index
    %12 = arith.index_cast %11 : i32 to index
    %c0_6 = arith.constant 0 : index
    %13 = vector.load %arg2[%c0_5, %12, %c0_6] : memref<1x576x16xbf16, #tpu.memory_space<vmem>>, vector<1x512x16xbf16>
    %14 = vector.shape_cast %13 : vector<1x512x16xbf16> to vector<512x16xbf16>
    %c1 = arith.constant 1 : index
    %c0_7 = arith.constant 0 : index
    %c0_8 = arith.constant 0 : index
    %15 = vector.load %arg3[%c1, %c0_7, %c0_8] : memref<3x16x128xbf16, #tpu.memory_space<vmem>>, vector<1x16x128xbf16>
    %16 = vector.shape_cast %15 : vector<1x16x128xbf16> to vector<16x128xbf16>
    %cst_9 = arith.constant dense<0.000000e+00> : vector<512x128xf32>
    %17 = tpu.matmul %14, %16, %cst_9 {dimension_numbers = #tpu.dot_dimension_numbers<[1], [0], [0], [1], [0, 0, 1, 1], [], []>} : vector<512x16xbf16>, vector<16x128xbf16>, vector<512x128xf32> -> vector<512x128xf32>
    %18 = arith.addf %8, %17 : vector<512x128xf32>
    %c512_i32_10 = arith.constant 512 : i32
    %19 = arith.muli %arg1, %c512_i32_10 : i32
    %c64_i32 = arith.constant 64 : i32
    %20 = arith.addi %19, %c64_i32 : i32
    %21 = tpu.assume_multiple %20, 16 : i32
    %c0_11 = arith.constant 0 : index
    %22 = arith.index_cast %21 : i32 to index
    %c0_12 = arith.constant 0 : index
    %23 = vector.load %arg2[%c0_11, %22, %c0_12] : memref<1x576x16xbf16, #tpu.memory_space<vmem>>, vector<1x512x16xbf16>
    %24 = vector.shape_cast %23 : vector<1x512x16xbf16> to vector<512x16xbf16>
    %c2 = arith.constant 2 : index
    %c0_13 = arith.constant 0 : index
    %c0_14 = arith.constant 0 : index
    %25 = vector.load %arg3[%c2, %c0_13, %c0_14] : memref<3x16x128xbf16, #tpu.memory_space<vmem>>, vector<1x16x128xbf16>
    %26 = vector.shape_cast %25 : vector<1x16x128xbf16> to vector<16x128xbf16>
    %cst_15 = arith.constant dense<0.000000e+00> : vector<512x128xf32>
    %27 = tpu.matmul %24, %26, %cst_15 {dimension_numbers = #tpu.dot_dimension_numbers<[1], [0], [0], [1], [0, 0, 1, 1], [], []>} : vector<512x16xbf16>, vector<16x128xbf16>, vector<512x128xf32> -> vector<512x128xf32>
    %28 = arith.addf %18, %27 : vector<512x128xf32>
    %c0_16 = arith.constant 0 : index
    %c0_17 = arith.constant 0 : index
    %29 = vector.load %arg4[%c0_16, %c0_17] : memref<1x128xf32, #tpu.memory_space<vmem>>, vector<1x128xf32>
    %30 = vector.broadcast %29 : vector<1x128xf32> to vector<512x128xf32>
    %31 = arith.addf %28, %30 : vector<512x128xf32>
    %cst_18 = arith.constant 0.000000e+00 : f32
    %32 = vector.broadcast %cst_18 : f32 to vector<512x128xf32>
    %33 = arith.maximumf %31, %32 : vector<512x128xf32>
    %c0_19 = arith.constant 0 : index
    %c0_20 = arith.constant 0 : index
    %c0_21 = arith.constant 0 : index
    %34 = vector.load %arg5[%c0_19, %c0_20, %c0_21] : memref<1x512x128xf32, #tpu.memory_space<vmem>>, vector<1x512x128xf32>
    %35 = vector.shape_cast %34 : vector<1x512x128xf32> to vector<512x128xf32>
    %36 = vector.shape_cast %33 : vector<512x128xf32> to vector<1x512x128xf32>
    tpu.vector_store %arg5[%c0_19, %c0_20, %c0_21], %36 {strides = array<i32>} : memref<1x512x128xf32, #tpu.memory_space<vmem>>, vector<1x512x128xf32>,
    return
  }
  func.func @transform_0(%arg0: i32, %arg1: i32) -> (i32, i32, i32) {
    %c0_i32 = arith.constant 0 : i32
    %c0_i32_0 = arith.constant 0 : i32
    %c0_i32_1 = arith.constant 0 : i32
    return %arg0, %c0_i32, %c0_i32_0 : i32, i32, i32
  }
  func.func @transform_1(%arg0: i32, %arg1: i32) -> (i32, i32, i32) {
    %c0_i32 = arith.constant 0 : i32
    %c0_i32_0 = arith.constant 0 : i32
    %c0_i32_1 = arith.constant 0 : i32
    %c0_i32_2 = arith.constant 0 : i32
    return %c0_i32, %c0_i32_0, %c0_i32_1 : i32, i32, i32
  }
  func.func @transform_2(%arg0: i32, %arg1: i32) -> (i32, i32) {
    %c0_i32 = arith.constant 0 : i32
    %c0_i32_0 = arith.constant 0 : i32
    %c0_i32_1 = arith.constant 0 : i32
    return %c0_i32, %c0_i32_0 : i32, i32
  }
  func.func @transform_3(%arg0: i32, %arg1: i32) -> (i32, i32, i32) {
    %c0_i32 = arith.constant 0 : i32
    %c0_i32_0 = arith.constant 0 : i32
    return %arg0, %arg1, %c0_i32 : i32, i32, i32
  }
}

</mosaic_0001>

<bundles_post_ra>
// kernel: conv_bn_relu2d.3
= control target key start
LH: loop header
LB: loop body
LE: loop exit
PB: predicated region body
PF: predicated region fallthrough
CT: control target
= control target key end

     0   :  { %s3348_s12 = smov 0   ;;  %s3350_s13 = smov 0   ;;  %s3795_s0 = inlined_call_operand.vmem [shape: bf16[2,576,16], index: 0, kind: input, shape index: {}]   ;;  %s3796_s1 = inlined_call_operand.vmem [shape: bf16[3,16,128], index: 1, kind: input, shape index: {}]   ;;  %s3797_s2 = inlined_call_operand.vmem [shape: f32[1,128], index: 2, kind: input, shape index: {}]   ;;  %s3798_s3 = inlined_call_operand.vmem [shape: f32[2,512,128], index: 3, kind: output, shape index: {}]  }
   0x1   :  { %s3352_s14 = smov 0  }
   0x2 LB: > { %s25_s15 = sadd.s32 1, %s3322_s13  ;;  %p2418_p0 = scmp.ge.s32.totalorder %s3326_s14, 1  ;;  %s3326_s14 = sphi %s3352_s14, %s13_s14   ;;  %s3322_s13 = sphi %s3350_s13, %s3800_s13   ;;  %s3318_s12 = sphi %s3348_s12, %s3799_s12  }
   0x3   : > { %p27_p1 = scmp.ge.s32.totalorder %s25_s15, 2  ;;  %p151_p2 = scmp.lt.s32.totalorder %s3326_s14, 3 }
   0x5   : > { %s3802_s15 = smov (%p27_p1, %s25_s15), 0  ;;  %p152_p3 = pnand %p2418_p0, %p151_p2 }
   0x6   : > { %v3205_v0 = vld [vmem:[%s3796_s1 + $0x8] sm:$0xff] (!%p152_p3)   ;;  %p179_p4 = scmp.lt.s32.totalorder (!%p152_p3), %s3318_s12, 1  ;;  %v3206_v1 = vld [vmem:[%s3796_s1] sm:$0xff] (!%p152_p3)   ;;  %v3209_v2 = vld [vmem:[%s3796_s1 + $0x10] sm:$0xff] (!%p152_p3)   ;;  %vm504_vm0 = vcmask (!%p152_p3), 130048  }
   0x7   : > { %155 = sbr.rel (%p152_p3) target bundleno = 426 (0x1aa), region = 32  ;;  %2852 = vmatprep.subr.bf16.mxu1 (!%p152_p3), %v3205_v0  ;;  %2918 = vmatprep.subr.bf16.mxu0 (!%p152_p3), %v3206_v1 }
   0x8   : > { %2853 = vmatpush3.bf16.msra.mxu1 (!%p152_p3), %v3205_v0  ;;  %2919 = vmatpush3.bf16.msra.mxu0 (!%p152_p3), %v3206_v1 }
   0x9   : > { %3050 = vmatprep.subr.bf16.mxu1 (!%p152_p3), %v3206_v1  ;;  %2984 = vmatprep.subr.bf16.mxu0 (!%p152_p3), %v3209_v2 }
   0xe   : > { %s3804_s12 = smov (!%p179_p4, %s3318_s12), 1 }
   0xf   : > { %s3180_s22 = smul.u32 288, %s3804_s12  ;;  %s2752_s28 = sshll.u32 %s3804_s12, 9 }
  0x10   : > { %s3633_s4 = scalar_lea.vmem %s3798_s3, %s2752_s28 }
  0x11   : > { %s3381_s25 = scalar_lea.vmem %s3795_s0, %s3180_s22 }
  0x12   : > { %v3207_v3 = vld [vmem:[%s3381_s25 + $0x10] sm:$0xff]   ;;  %v3208_v4 = vld [vmem:[%s3381_s25] sm:$0xff]   ;;  %v3210_v5 = vld [vmem:[%s3381_s25 + $0x18] sm:$0xff]  }
  0x13   : > { %2854 = vmatprep.mubr.msk.bf16.mxu1 %vm504_vm0, %v3207_v3  ;;  %2920 = vmatprep.mubr.msk.bf16.mxu0 %vm504_vm0, %v3208_v4  ;;  %v3211_v6 = vld [vmem:[%s3381_s25 + $0x8] sm:$0xff]   ;;  %v3212_v7 = vld [vmem:[%s3381_s25 + $0x20] sm:$0xff]   ;;  %v3213_v8 = vld [vmem:[%s3381_s25 + $0x10] sm:$0xff]  }
  0x14   : > { %2855 = vmatmul.mubr.msk.bf16.vlgmr.msra.gmra.mrb[0].mxu1 %vm504_vm0, %v3210_v5  ;;  %2921 = vmatmul.mubr.msk.bf16.vlgmr.msra.gmra.mrb[0].mxu0 %vm504_vm0, %v3211_v6  ;;  %v3214_v9 = vld [vmem:[%s3381_s25 + $0x28] sm:$0xff]   ;;  %v3215_v10 = vld [vmem:[%s3381_s25 + $0x18] sm:$0xff]   ;;  %v3216_v11 = vld [vmem:[%s3381_s25 + $0x30] sm:$0xff]  }
  0x15   : > { %3051 = vmatpush3.bf16.msra.mxu1 %v3206_v1  ;;  %2985 = vmatpush3.bf16.msra.mxu0 %v3209_v2  ;;  %v3217_v12 = vld [vmem:[%s3381_s25 + $0x20] sm:$0xff]   ;;  %v3218_v13 = vld [vmem:[%s3381_s25 + $0x38] sm:$0xff]   ;;  %v3219_v14 = vld [vmem:[%s3381_s25 + $0x28] sm:$0xff]  }
  0x16   : > { %2858 = vmatprep.mubr.msk.bf16.mxu1 %vm504_vm0, %v3212_v7  ;;  %2924 = vmatprep.mubr.msk.bf16.mxu0 %vm504_vm0, %v3213_v8  ;;  %v3220_v15 = vld [vmem:[%s3381_s25 + $0x40] sm:$0xff]   ;;  %v3221_v16 = vld [vmem:[%s3381_s25 + $0x30] sm:$0xff]   ;;  %v3222_v17 = vld [vmem:[%s3381_s25 + $0x48] sm:$0xff]  }
  0x17   : > { %v3223_v18 = vld [vmem:[%s3381_s25 + $0x38] sm:$0xff]   ;;  %v3224_v19 = vld [vmem:[%s3381_s25 + $0x50] sm:$0xff]   ;;  %v3225_v20 = vld [vmem:[%s3381_s25 + $0x40] sm:$0xff]  }
  0x18   : > { %v3226_v21 = vld [vmem:[%s3381_s25 + $0x58] sm:$0xff]   ;;  %v3227_v22 = vld [vmem:[%s3381_s25 + $0x48] sm:$0xff]   ;;  %v3228_v23 = vld [vmem:[%s3381_s25 + $0x60] sm:$0xff]  }
  0x19   : > { %v3229_v24 = vld [vmem:[%s3381_s25 + $0x50] sm:$0xff]   ;;  %v3230_v25 = vld [vmem:[%s3381_s25 + $0x68] sm:$0xff]   ;;  %v3231_v26 = vld [vmem:[%s3381_s25 + $0x58] sm:$0xff]  }
  0x1a   : > { %v3232_v27 = vld [vmem:[%s3381_s25 + $0x70] sm:$0xff]   ;;  %v3233_v28 = vld [vmem:[%s3381_s25 + $0x60] sm:$0xff]   ;;  %v3234_v29 = vld [vmem:[%s3381_s25 + $0x78] sm:$0xff]  }
  0x1b   : > { %v3235_v30 = vld [vmem:[%s3381_s25 + $0x68] sm:$0xff]   ;;  %v3236_v31 = vld [vmem:[%s3381_s25 + $0x80] sm:$0xff]   ;;  %v3237_v32 = vld [vmem:[%s3381_s25 + $0x70] sm:$0xff]  }
  0x1c   : > { %2859 = vmatmul.mubr.msk.bf16.gmra.mrb[4].mxu1 %vm504_vm0, %v3214_v9  ;;  %2925 = vmatmul.mubr.msk.bf16.gmra.mrb[4].mxu0 %vm504_vm0, %v3215_v10  ;;  %v3238_v33 = vld [vmem:[%s3381_s25 + $0x88] sm:$0xff]   ;;  %v3239_v34 = vld [vmem:[%s3381_s25 + $0x78] sm:$0xff]   ;;  %v3240_v35 = vld [vmem:[%s3381_s25 + $0x90] sm:$0xff]  }
  0x1d   : > { %2862 = vmatprep.mubr.msk.bf16.mxu1 %vm504_vm0, %v3216_v11  ;;  %2928 = vmatprep.mubr.msk.bf16.mxu0 %vm504_vm0, %v3217_v12  ;;  %v3241_v36 = vld [vmem:[%s3381_s25 + $0x20] sm:$0xff]   ;;  %v3242_v37 = vld [vmem:[%s3381_s25 + $0x98] sm:$0xff]   ;;  %v3243_v38 = vld [vmem:[%s3381_s25 + $0x28] sm:$0xff]  }
  0x1e   : > { %v3244_v39 = vld [vmem:[%s3381_s25 + $0xa0] sm:$0xff]   ;;  %v3245_v40 = vld [vmem:[%s3381_s25 + $0x30] sm:$0xff]   ;;  %v3246_v41 = vld [vmem:[%s3381_s25 + $0xa8] sm:$0xff]  }
  0x1f   : > { %v3247_v42 = vld [vmem:[%s3381_s25 + $0x38] sm:$0xff]   ;;  %v3248_v43 = vld [vmem:[%s3381_s25 + $0xb0] sm:$0xff]   ;;  %v3249_v44 = vld [vmem:[%s3381_s25 + $0x40] sm:$0xff]  }
  0x20   : > { %v3250_v45 = vld [vmem:[%s3381_s25 + $0xb8] sm:$0xff]   ;;  %v3251_v46 = vld [vmem:[%s3381_s25 + $0x48] sm:$0xff]   ;;  %v3252_v47 = vld [vmem:[%s3381_s25 + $0xc0] sm:$0xff]  }
  0x21   : > { %v3253_v48 = vld [vmem:[%s3381_s25 + $0x50] sm:$0xff]   ;;  %v3254_v49 = vld [vmem:[%s3381_s25 + $0xc8] sm:$0xff]   ;;  %v3255_v50 = vld [vmem:[%s3381_s25 + $0x58] sm:$0xff]  }
  0x22   : > { %v3256_v51 = vld [vmem:[%s3381_s25 + $0xd0] sm:$0xff]   ;;  %v3257_v52 = vld [vmem:[%s3381_s25 + $0x60] sm:$0xff]   ;;  %v3258_v53 = vld [vmem:[%s3381_s25 + $0xd8] sm:$0xff]  }
  0x23   : > { %v3259_v54 = vld [vmem:[%s3381_s25 + $0x68] sm:$0xff]   ;;  %v3260_v55 = vld [vmem:[%s3381_s25 + $0xe0] sm:$0xff]   ;;  %v3261_v56 = vld [vmem:[%s3381_s25 + $0x70] sm:$0xff]  }
  0x24   : > { %2863 = vmatmul.mubr.msk.bf16.gmra.mrb[8].mxu1 %vm504_vm0, %v3218_v13  ;;  %2929 = vmatmul.mubr.msk.bf16.gmra.mrb[8].mxu0 %vm504_vm0, %v3219_v14  ;;  %v3262_v57 = vld [vmem:[%s3381_s25 + $0xe8] sm:$0xff]   ;;  %v3263_v58 = vld [vmem:[%s3381_s25 + $0x78] sm:$0xff]   ;;  %v3264_v59 = vld [vmem:[%s3381_s25 + $0xf0] sm:$0xff]  }
  0x25   : > { %2866 = vmatprep.mubr.msk.bf16.mxu1 %vm504_vm0, %v3220_v15  ;;  %2932 = vmatprep.mubr.msk.bf16.mxu0 %vm504_vm0, %v3221_v16  ;;  %v3265_v60 = vld [vmem:[%s3381_s25 + $0x80] sm:$0xff]   ;;  %v3266_v61 = vld [vmem:[%s3381_s25 + $0xf8] sm:$0xff]   ;;  %v3267_v62 = vld [vmem:[%s3381_s25 + $0x88] sm:$0xff]  }
  0x26   : > { %v3268_v63 = vld [vmem:[%s3381_s25 + $0x100] sm:$0xff]   ;;  %v3269_v0 = vld [vmem:[%s3381_s25 + $0x90] sm:$0xff]   ;;  %v3270_v1 = vld [vmem:[%s3381_s25 + $0x108] sm:$0xff]  }
  0x27   : > { %v3271_v2 = vld [vmem:[%s3381_s25 + $0x98] sm:$0xff]   ;;  %v3272_v3 = vld [vmem:[%s3381_s25 + $0x80] sm:$0xff]   ;;  %v3274_v5 = vld [vmem:[%s3381_s25 + $0x88] sm:$0xff]  }
  0x28   : > { %v3273_v4 = vld [vmem:[%s3381_s25 + $0xa0] sm:$0xff]   ;;  %v3275_v6 = vld [vmem:[%s3381_s25 + $0xa8] sm:$0xff]   ;;  %v3276_v7 = vld [vmem:[%s3381_s25 + $0x90] sm:$0xff]  }
  0x29   : > { %v3277_v8 = vld [vmem:[%s3381_s25 + $0xb0] sm:$0xff]   ;;  %v3278_v9 = vld [vmem:[%s3381_s25 + $0x98] sm:$0xff]   ;;  %v3280_v11 = vld [vmem:[%s3381_s25 + $0xa0] sm:$0xff]  }
  0x2a   : > { %v3279_v10 = vld [vmem:[%s3381_s25 + $0xb8] sm:$0xff]   ;;  %v3281_v12 = vld [vmem:[%s3381_s25 + $0xc0] sm:$0xff]   ;;  %v3282_v13 = vld [vmem:[%s3381_s25 + $0xa8] sm:$0xff]  }
  0x2b   : > { %v3283_v14 = vld [vmem:[%s3381_s25 + $0xc8] sm:$0xff]   ;;  %v3284_v15 = vld [vmem:[%s3381_s25 + $0xb0] sm:$0xff]  }
  0x2c   : > { %2867 = vmatmul.mubr.msk.bf16.gmra.mrb[12].mxu1 %vm504_vm0, %v3222_v17  ;;  %2933 = vmatmul.mubr.msk.bf16.gmra.mrb[12].mxu0 %vm504_vm0, %v3223_v18  ;;  %v3285_v16 = vld [vmem:[%s3381_s25 + $0xd0] sm:$0xff]   ;;  %v3286_v17 = vld [vmem:[%s3381_s25 + $0xb8] sm:$0xff]  }
  0x2d   : > { %2870 = vmatprep.mubr.msk.bf16.mxu1 %vm504_vm0, %v3224_v19  ;;  %2936 = vmatprep.mubr.msk.bf16.mxu0 %vm504_vm0, %v3225_v20  ;;  %v3287_v18 = vld [vmem:[%s3381_s25 + $0xd8] sm:$0xff]   ;;  %v3288_v19 = vld [vmem:[%s3381_s25 + $0xc0] sm:$0xff]  }
  0x2e   : > { %v3289_v20 = vld [vmem:[%s3381_s25 + $0xe0] sm:$0xff]  }
  0x34   : > { %2871 = vmatmul.mubr.msk.bf16.gmra.mrb[16].mxu1 %vm504_vm0, %v3226_v21  ;;  %2937 = vmatmul.mubr.msk.bf16.gmra.mrb[16].mxu0 %vm504_vm0, %v3227_v22  ;;  %v3290_v21 = vld [vmem:[%s3381_s25 + $0xc8] sm:$0xff]  }
  0x35   : > { %2874 = vmatprep.mubr.msk.bf16.mxu1 %vm504_vm0, %v3228_v23  ;;  %2940 = vmatprep.mubr.msk.bf16.mxu0 %vm504_vm0, %v3229_v24  ;;  %v3291_v22 = vld [vmem:[%s3381_s25 + $0xe8] sm:$0xff]   ;;  %v3292_v23 = vld [vmem:[%s3381_s25 + $0xd0] sm:$0xff]  }
  0x36   : > { %v3293_v24 = vld [vmem:[%s3381_s25 + $0xf0] sm:$0xff]  }
  0x3c   : > { %2875 = vmatmul.mubr.msk.bf16.gmra.mrb[20].mxu1 %vm504_vm0, %v3230_v25  ;;  %2941 = vmatmul.mubr.msk.bf16.gmra.mrb[20].mxu0 %vm504_vm0, %v3231_v26  ;;  %v3294_v25 = vld [vmem:[%s3381_s25 + $0xd8] sm:$0xff]  }
  0x3d   : > { %2878 = vmatprep.mubr.msk.bf16.mxu1 %vm504_vm0, %v3232_v27  ;;  %2944 = vmatprep.mubr.msk.bf16.mxu0 %vm504_vm0, %v3233_v28  ;;  %v3295_v26 = vld [vmem:[%s3381_s25 + $0xf8] sm:$0xff]   ;;  %v3296_v27 = vld [vmem:[%s3381_s25 + $0xe0] sm:$0xff]  }
  0x3e   : > { %v3297_v28 = vld [vmem:[%s3381_s25 + $0x100] sm:$0xff]  }
  0x44   : > { %2879 = vmatmul.mubr.msk.bf16.gmra.mrb[24].mxu1 %vm504_vm0, %v3234_v29  ;;  %2945 = vmatmul.mubr.msk.bf16.gmra.mrb[24].mxu0 %vm504_vm0, %v3235_v30  ;;  %v3298_v29 = vld [vmem:[%s3381_s25 + $0xe8] sm:$0xff]  }
  0x45   : > { %2882 = vmatprep.mubr.msk.bf16.mxu1 %vm504_vm0, %v3236_v31  ;;  %2948 = vmatprep.mubr.msk.bf16.mxu0 %vm504_vm0, %v3237_v32  ;;  %v3299_v30 = vld [vmem:[%s3381_s25 + $0x108] sm:$0xff]   ;;  %v3300_v31 = vld [vmem:[%s3381_s25 + $0xf0] sm:$0xff]  }
  0x46   : > { %v3301_v32 = vld [vmem:[%s3381_s25 + $0x110] sm:$0xff]  }
  0x4c   : > { %2883 = vmatmul.mubr.msk.bf16.gmra.mrb[28].mxu1 %vm504_vm0, %v3238_v33  ;;  %2949 = vmatmul.mubr.msk.bf16.gmra.mrb[28].mxu0 %vm504_vm0, %v3239_v34  ;;  %v3302_v33 = vld [vmem:[%s3381_s25 + $0xf8] sm:$0xff]  }
  0x4d   : > { %2886 = vmatprep.mubr.msk.bf16.mxu1 %vm504_vm0, %v3240_v35  ;;  %2986 = vmatprep.mubr.msk.bf16.mxu0 %vm504_vm0, %v3241_v36  ;;  %v3303_v34 = vld [vmem:[%s3381_s25 + $0x118] sm:$0xff]  }
  0x54   : > { %2887 = vmatmul.mubr.msk.bf16.gmra.mrb[32].mxu1 %vm504_vm0, %v3242_v37  ;;  %2987 = vmatmul.mubr.msk.bf16.vlgmr.msra.gmra.mrb[0].mxu0 %vm504_vm0, %v3243_v38 }
  0x55   : > { %2890 = vmatprep.mubr.msk.bf16.mxu1 %vm504_vm0, %v3244_v39  ;;  %2990 = vmatprep.mubr.msk.bf16.mxu0 %vm504_vm0, %v3245_v40 }
  0x5c   : > { %2891 = vmatmul.mubr.msk.bf16.gmra.mrb[36].mxu1 %vm504_vm0, %v3246_v41  ;;  %2991 = vmatmul.mubr.msk.bf16.gmra.mrb[4].mxu0 %vm504_vm0, %v3247_v42 }
  0x5d   : > { %2894 = vmatprep.mubr.msk.bf16.mxu1 %vm504_vm0, %v3248_v43  ;;  %2994 = vmatprep.mubr.msk.bf16.mxu0 %vm504_vm0, %v3249_v44 }
  0x64   : > { %2895 = vmatmul.mubr.msk.bf16.gmra.mrb[40].mxu1 %vm504_vm0, %v3250_v45  ;;  %2995 = vmatmul.mubr.msk.bf16.gmra.mrb[8].mxu0 %vm504_vm0, %v3251_v46 }
  0x65   : > { %2898 = vmatprep.mubr.msk.bf16.mxu1 %vm504_vm0, %v3252_v47  ;;  %2998 = vmatprep.mubr.msk.bf16.mxu0 %vm504_vm0, %v3253_v48 }
  0x6c   : > { %2899 = vmatmul.mubr.msk.bf16.gmra.mrb[44].mxu1 %vm504_vm0, %v3254_v49  ;;  %2999 = vmatmul.mubr.msk.bf16.gmra.mrb[12].mxu0 %vm504_vm0, %v3255_v50 }
  0x6d   : > { %2902 = vmatprep.mubr.msk.bf16.mxu1 %vm504_vm0, %v3256_v51  ;;  %3002 = vmatprep.mubr.msk.bf16.mxu0 %vm504_vm0, %v3257_v52 }
  0x74   : > { %2903 = vmatmul.mubr.msk.bf16.gmra.mrb[48].mxu1 %vm504_vm0, %v3258_v53  ;;  %3003 = vmatmul.mubr.msk.bf16.gmra.mrb[16].mxu0 %vm504_vm0, %v3259_v54 }
  0x75   : > { %2906 = vmatprep.mubr.msk.bf16.mxu1 %vm504_vm0, %v3260_v55  ;;  %3006 = vmatprep.mubr.msk.bf16.mxu0 %vm504_vm0, %v3261_v56 }
  0x7c   : > { %2907 = vmatmul.mubr.msk.bf16.gmra.mrb[52].mxu1 %vm504_vm0, %v3262_v57  ;;  %3007 = vmatmul.mubr.msk.bf16.gmra.mrb[20].mxu0 %vm504_vm0, %v3263_v58 }
  0x7d   : > { %2910 = vmatprep.mubr.msk.bf16.mxu1 %vm504_vm0, %v3264_v59  ;;  %3010 = vmatprep.mubr.msk.bf16.mxu0 %vm504_vm0, %v3265_v60 }
  0x84   : > { %2911 = vmatmul.mubr.msk.bf16.gmra.mrb[56].mxu1 %vm504_vm0, %v3266_v61  ;;  %3011 = vmatmul.mubr.msk.bf16.gmra.mrb[24].mxu0 %vm504_vm0, %v3267_v62 }
  0x85   : > { %2914 = vmatprep.mubr.msk.bf16.mxu1 %vm504_vm0, %v3268_v63  ;;  %3014 = vmatprep.mubr.msk.bf16.mxu0 %vm504_vm0, %v3269_v0 }
  0x8c   : > { %2915 = vmatmul.mubr.msk.bf16.gmra.mrb[60].mxu1 %vm504_vm0, %v3270_v1  ;;  %3015 = vmatmul.mubr.msk.bf16.gmra.mrb[28].mxu0 %vm504_vm0, %v3271_v2 }
  0x8d   : > { %2952 = vmatprep.mubr.msk.bf16.mxu1 %vm504_vm0, %v3272_v3  ;;  %3018 = vmatprep.mubr.msk.bf16.mxu0 %vm504_vm0, %v3273_v4  ;;  %v3626_v4 = vld [vmem:[%s3797_s2] ss:$0 sm:$0xff] }
  0x94   : > { %2953 = vmatmul.mubr.msk.bf16.vlgmr.msra.gmra.mrb[32].mxu1 %vm504_vm0, %v3274_v5  ;;  %3019 = vmatmul.mubr.msk.bf16.gmra.mrb[32].mxu0 %vm504_vm0, %v3275_v6 }
  0x95   : > { %2956 = vmatprep.mubr.msk.bf16.mxu1 %vm504_vm0, %v3276_v7  ;;  %3022 = vmatprep.mubr.msk.bf16.mxu0 %vm504_vm0, %v3277_v8 }
  0x9c   : > { %2957 = vmatmul.mubr.msk.bf16.gmra.mrb[36].mxu1 %vm504_vm0, %v3278_v9  ;;  %3023 = vmatmul.mubr.msk.bf16.gmra.mrb[36].mxu0 %vm504_vm0, %v3279_v10 }
  0x9d   : > { %2960 = vmatprep.mubr.msk.bf16.mxu1 %vm504_vm0, %v3280_v11  ;;  %3026 = vmatprep.mubr.msk.bf16.mxu0 %vm504_vm0, %v3281_v12 }
  0xa4   : > { %2961 = vmatmul.mubr.msk.bf16.gmra.mrb[40].mxu1 %vm504_vm0, %v3282_v13  ;;  %3027 = vmatmul.mubr.msk.bf16.gmra.mrb[40].mxu0 %vm504_vm0, %v3283_v14 }
  0xa5   : > { %2964 = vmatprep.mubr.msk.bf16.mxu1 %vm504_vm0, %v3284_v15  ;;  %3030 = vmatprep.mubr.msk.bf16.mxu0 %vm504_vm0, %v3285_v16 }
  0xac   : > { %2965 = vmatmul.mubr.msk.bf16.gmra.mrb[44].mxu1 %vm504_vm0, %v3286_v17  ;;  %3031 = vmatmul.mubr.msk.bf16.gmra.mrb[44].mxu0 %vm504_vm0, %v3287_v18 }
  0xad   : > { %2968 = vmatprep.mubr.msk.bf16.mxu1 %vm504_vm0, %v3288_v19  ;;  %3034 = vmatprep.mubr.msk.bf16.mxu0 %vm504_vm0, %v3289_v20 }
  0xb4   : > { %2969 = vmatmul.mubr.msk.bf16.gmra.mrb[48].mxu1 %vm504_vm0, %v3290_v21  ;;  %3035 = vmatmul.mubr.msk.bf16.gmra.mrb[48].mxu0 %vm504_vm0, %v3291_v22 }
  0xb5   : > { %2972 = vmatprep.mubr.msk.bf16.mxu1 %vm504_vm0, %v3292_v23  ;;  %3038 = vmatprep.mubr.msk.bf16.mxu0 %vm504_vm0, %v3293_v24 }
  0xbc   : > { %2973 = vmatmul.mubr.msk.bf16.gmra.mrb[52].mxu1 %vm504_vm0, %v3294_v25  ;;  %3039 = vmatmul.mubr.msk.bf16.gmra.mrb[52].mxu0 %vm504_vm0, %v3295_v26 }
  0xbd   : > { %2976 = vmatprep.mubr.msk.bf16.mxu1 %vm504_vm0, %v3296_v27  ;;  %3042 = vmatprep.mubr.msk.bf16.mxu0 %vm504_vm0, %v3297_v28 }
  0xc4   : > { %2977 = vmatmul.mubr.msk.bf16.gmra.mrb[56].mxu1 %vm504_vm0, %v3298_v29  ;;  %3043 = vmatmul.mubr.msk.bf16.gmra.mrb[56].mxu0 %vm504_vm0, %v3299_v30 }
  0xc5   : > { %2980 = vmatprep.mubr.msk.bf16.mxu1 %vm504_vm0, %v3300_v31  ;;  %3046 = vmatprep.mubr.msk.bf16.mxu0 %vm504_vm0, %v3301_v32 }
  0xcc   : > { %2981 = vmatmul.mubr.msk.bf16.gmra.mrb[60].mxu1 %vm504_vm0, %v3302_v33  ;;  %3047 = vmatmul.mubr.msk.bf16.gmra.mrb[60].mxu0 %vm504_vm0, %v3303_v34 }
  0xe7   : > { %v2856_v35 = vpop.f32.mrb[0].mxu1 }
  0xe8   : > { %v635_v36 = vpop.f32.mrb[1].mxu1 }
  0xe9   : > { %v2857_v37 = vpop.f32.mrb[2].mxu1 }
  0xea   : > { %v638_v38 = vpop.f32.mrb[3].mxu1 }
  0xef   : > { %v2860_v39 = vpop.f32.mrb[4].mxu1 }
  0xf0   : > { %v651_v40 = vpop.f32.mrb[5].mxu1 }
  0xf1   : > { %v2861_v41 = vpop.f32.mrb[6].mxu1 }
  0xf2   : > { %v654_v42 = vpop.f32.mrb[7].mxu1 }
  0xf7   : > { %v3575_v43 = vpop.f32.mrb[8].mxu1 }
  0xf8   : > { %v3577_v44 = vpop.f32.mrb[9].mxu1 }
  0xf9   : > { %v3579_v45 = vpop.f32.mrb[10].mxu1 }
  0xfa   : > { %v3581_v46 = vpop.f32.mrb[11].mxu1 }
  0xff   : > { %v3583_v47 = vpop.f32.mrb[12].mxu1 }
 0x100   : > { %v3585_v48 = vpop.f32.mrb[13].mxu1 }
 0x101   : > { %v3587_v49 = vpop.f32.mrb[14].mxu1 }
 0x102   : > { %v3589_v50 = vpop.f32.mrb[15].mxu1 }
 0x107   : > { %v3591_v51 = vpop.f32.mrb[16].mxu1 }
 0x108   : > { %v3593_v52 = vpop.f32.mrb[17].mxu1 }
 0x109   : > { %v3595_v53 = vpop.f32.mrb[18].mxu1 }
 0x10a   : > { %v3597_v54 = vpop.f32.mrb[19].mxu1 }
 0x10f   : > { %v3599_v55 = vpop.f32.mrb[20].mxu1 }
 0x110   : > { %v3601_v56 = vpop.f32.mrb[21].mxu1 }
 0x111   : > { %v3603_v57 = vpop.f32.mrb[22].mxu1 }
 0x112   : > { %v3605_v58 = vpop.f32.mrb[23].mxu1 }
 0x117   : > { %v3607_v59 = vpop.f32.mrb[24].mxu1 }
 0x118   : > { %v3609_v60 = vpop.f32.mrb[25].mxu1 }
 0x119   : > { %v3611_v61 = vpop.f32.mrb[26].mxu1 }
 0x11a   : > { %v3613_v62 = vpop.f32.mrb[27].mxu1 }
 0x11f   : > { %v3615_v63 = vpop.f32.mrb[28].mxu1 }
 0x120   : > { %v3617_v0 = vpop.f32.mrb[29].mxu1 }
 0x121   : > { %v3619_v1 = vpop.f32.mrb[30].mxu1 }
 0x122   : > { %v3621_v2 = vpop.f32.mrb[31].mxu1 }
 0x127   : > { %v2988_v3 = vpop.f32.mrb[0].mxu0 }
 0x128   : > { %v3052_v5 = vadd.f32 %v2988_v3, %v2856_v35  ;;  %v1809_v6 = vpop.f32.mrb[1].mxu0 }
 0x129   : > { %v3053_v7 = vadd.f32 %v1809_v6, %v635_v36  ;;  %v2989_v8 = vpop.f32.mrb[2].mxu0 }
 0x12a   : > { %v2137_v9 = vadd.f32 %v3052_v5, %v3626_v4  ;;  %v3054_v10 = vadd.f32 %v2989_v8, %v2857_v37  ;;  %v1812_v11 = vpop.f32.mrb[3].mxu0 }
 0x12b   : > { %v2135_v12 = vadd.f32 %v3053_v7, %v3626_v4  ;;  %v3055_v13 = vadd.f32 %v1812_v11, %v638_v38 }
 0x12c   : > { %v2201_v14 = vmax.f32 %v2137_v9, 0.0  ;;  %v2138_v15 = vadd.f32 %v3054_v10, %v3626_v4 }
 0x12d   : > { %v2199_v16 = vmax.f32 %v2135_v12, 0.0  ;;  %v2136_v17 = vadd.f32 %v3055_v13, %v3626_v4 }
 0x12e   : > { %2265 = vst [vmem:[%s3633_s4 + $0x10] sm:$0xff] %v2201_v14  ;;  %v2202_v18 = vmax.f32 %v2138_v15, 0.0 }
 0x12f   : > { %2263 = vst [vmem:[%s3633_s4] sm:$0xff] %v2199_v16  ;;  %v2200_v19 = vmax.f32 %v2136_v17, 0.0  ;;  %v2992_v20 = vpop.f32.mrb[4].mxu0 }
 0x130   : > { %2266 = vst [vmem:[%s3633_s4 + $0x18] sm:$0xff] %v2202_v18  ;;  %v3056_v21 = vadd.f32 %v2992_v20, %v2860_v39  ;;  %v1825_v22 = vpop.f32.mrb[5].mxu0 }
 0x131   : > { %2264 = vst [vmem:[%s3633_s4 + $0x8] sm:$0xff] %v2200_v19  ;;  %v3057_v23 = vadd.f32 %v1825_v22, %v651_v40  ;;  %v2993_v24 = vpop.f32.mrb[6].mxu0 }
 0x132   : > { %v2141_v25 = vadd.f32 %v3056_v21, %v3626_v4  ;;  %v3058_v26 = vadd.f32 %v2993_v24, %v2861_v41  ;;  %v1828_v27 = vpop.f32.mrb[7].mxu0 }
 0x133   : > { %v2139_v28 = vadd.f32 %v3057_v23, %v3626_v4  ;;  %v3059_v29 = vadd.f32 %v1828_v27, %v654_v42 }
 0x134   : > { %v2205_v30 = vmax.f32 %v2141_v25, 0.0  ;;  %v2142_v31 = vadd.f32 %v3058_v26, %v3626_v4 }
 0x135   : > { %v2203_v32 = vmax.f32 %v2139_v28, 0.0  ;;  %v2140_v33 = vadd.f32 %v3059_v29, %v3626_v4 }
 0x136   : > { %2269 = vst [vmem:[%s3633_s4 + $0x30] sm:$0xff] %v2205_v30  ;;  %v2206_v34 = vmax.f32 %v2142_v31, 0.0 }
 0x137   : > { %2267 = vst [vmem:[%s3633_s4 + $0x20] sm:$0xff] %v2203_v32  ;;  %v2204_v35 = vmax.f32 %v2140_v33, 0.0  ;;  %v2996_v36 = vpop.f32.mrb[8].mxu0 }
 0x138   : > { %2270 = vst [vmem:[%s3633_s4 + $0x38] sm:$0xff] %v2206_v34  ;;  %v3060_v37 = vadd.f32 %v2996_v36, %v3575_v43  ;;  %v1841_v38 = vpop.f32.mrb[9].mxu0 }
 0x139   : > { %2268 = vst [vmem:[%s3633_s4 + $0x28] sm:$0xff] %v2204_v35  ;;  %v3061_v39 = vadd.f32 %v1841_v38, %v3577_v44  ;;  %v2997_v40 = vpop.f32.mrb[10].mxu0 }
 0x13a   : > { %v2145_v41 = vadd.f32 %v3060_v37, %v3626_v4  ;;  %v3062_v42 = vadd.f32 %v2997_v40, %v3579_v45  ;;  %v1844_v3 = vpop.f32.mrb[11].mxu0 }
 0x13b   : > { %v2143_v5 = vadd.f32 %v3061_v39, %v3626_v4  ;;  %v3063_v6 = vadd.f32 %v1844_v3, %v3581_v46 }
 0x13c   : > { %v2209_v7 = vmax.f32 %v2145_v41, 0.0  ;;  %v2146_v43 = vadd.f32 %v3062_v42, %v3626_v4 }
 0x13d   : > { %v2207_v8 = vmax.f32 %v2143_v5, 0.0  ;;  %v2144_v9 = vadd.f32 %v3063_v6, %v3626_v4 }
 0x13e   : > { %2273 = vst [vmem:[%s3633_s4 + $0x50] sm:$0xff] %v2209_v7  ;;  %v2210_v44 = vmax.f32 %v2146_v43, 0.0 }
 0x13f   : > { %2271 = vst [vmem:[%s3633_s4 + $0x40] sm:$0xff] %v2207_v8  ;;  %v2208_v10 = vmax.f32 %v2144_v9, 0.0  ;;  %v3000_v11 = vpop.f32.mrb[12].mxu0 }
 0x140   : > { %2274 = vst [vmem:[%s3633_s4 + $0x58] sm:$0xff] %v2210_v44  ;;  %v3064_v45 = vadd.f32 %v3000_v11, %v3583_v47  ;;  %v1857_v12 = vpop.f32.mrb[13].mxu0 }
 0x141   : > { %2272 = vst [vmem:[%s3633_s4 + $0x48] sm:$0xff] %v2208_v10  ;;  %v3065_v46 = vadd.f32 %v1857_v12, %v3585_v48  ;;  %v3001_v13 = vpop.f32.mrb[14].mxu0 }
 0x142   : > { %v2149_v14 = vadd.f32 %v3064_v45, %v3626_v4  ;;  %v3066_v15 = vadd.f32 %v3001_v13, %v3587_v49  ;;  %v1860_v16 = vpop.f32.mrb[15].mxu0 }
 0x143   : > { %v2147_v17 = vadd.f32 %v3065_v46, %v3626_v4  ;;  %v3067_v18 = vadd.f32 %v1860_v16, %v3589_v50 }
 0x144   : > { %v2213_v19 = vmax.f32 %v2149_v14, 0.0  ;;  %v2150_v47 = vadd.f32 %v3066_v15, %v3626_v4 }
 0x145   : > { %v2211_v20 = vmax.f32 %v2147_v17, 0.0  ;;  %v2148_v21 = vadd.f32 %v3067_v18, %v3626_v4 }
 0x146   : > { %2277 = vst [vmem:[%s3633_s4 + $0x70] sm:$0xff] %v2213_v19  ;;  %v2214_v48 = vmax.f32 %v2150_v47, 0.0 }
 0x147   : > { %2275 = vst [vmem:[%s3633_s4 + $0x60] sm:$0xff] %v2211_v20  ;;  %v2212_v22 = vmax.f32 %v2148_v21, 0.0  ;;  %v3004_v23 = vpop.f32.mrb[16].mxu0 }
 0x148   : > { %2278 = vst [vmem:[%s3633_s4 + $0x78] sm:$0xff] %v2214_v48  ;;  %v3068_v49 = vadd.f32 %v3004_v23, %v3591_v51  ;;  %v1873_v24 = vpop.f32.mrb[17].mxu0 }
 0x149   : > { %2276 = vst [vmem:[%s3633_s4 + $0x68] sm:$0xff] %v2212_v22  ;;  %v3069_v50 = vadd.f32 %v1873_v24, %v3593_v52  ;;  %v3005_v25 = vpop.f32.mrb[18].mxu0 }
 0x14a   : > { %v2153_v26 = vadd.f32 %v3068_v49, %v3626_v4  ;;  %v3070_v27 = vadd.f32 %v3005_v25, %v3595_v53  ;;  %v1876_v28 = vpop.f32.mrb[19].mxu0 }
 0x14b   : > { %v2151_v29 = vadd.f32 %v3069_v50, %v3626_v4  ;;  %v3071_v30 = vadd.f32 %v1876_v28, %v3597_v54 }
 0x14c   : > { %v2217_v31 = vmax.f32 %v2153_v26, 0.0  ;;  %v2154_v51 = vadd.f32 %v3070_v27, %v3626_v4 }
 0x14d   : > { %v2215_v32 = vmax.f32 %v2151_v29, 0.0  ;;  %v2152_v33 = vadd.f32 %v3071_v30, %v3626_v4 }
 0x14e   : > { %2281 = vst [vmem:[%s3633_s4 + $0x90] sm:$0xff] %v2217_v31  ;;  %v2218_v52 = vmax.f32 %v2154_v51, 0.0 }
 0x14f   : > { %2279 = vst [vmem:[%s3633_s4 + $0x80] sm:$0xff] %v2215_v32  ;;  %v2216_v34 = vmax.f32 %v2152_v33, 0.0  ;;  %v3008_v35 = vpop.f32.mrb[20].mxu0 }
 0x150   : > { %2282 = vst [vmem:[%s3633_s4 + $0x98] sm:$0xff] %v2218_v52  ;;  %v3072_v53 = vadd.f32 %v3008_v35, %v3599_v55  ;;  %v1889_v36 = vpop.f32.mrb[21].mxu0 }
 0x151   : > { %2280 = vst [vmem:[%s3633_s4 + $0x88] sm:$0xff] %v2216_v34  ;;  %v3073_v54 = vadd.f32 %v1889_v36, %v3601_v56  ;;  %v3009_v37 = vpop.f32.mrb[22].mxu0 }
 0x152   : > { %v2157_v38 = vadd.f32 %v3072_v53, %v3626_v4  ;;  %v3074_v39 = vadd.f32 %v3009_v37, %v3603_v57  ;;  %v1892_v40 = vpop.f32.mrb[23].mxu0 }
 0x153   : > { %v2155_v41 = vadd.f32 %v3073_v54, %v3626_v4  ;;  %v3075_v42 = vadd.f32 %v1892_v40, %v3605_v58 }
 0x154   : > { %v2221_v3 = vmax.f32 %v2157_v38, 0.0  ;;  %v2158_v55 = vadd.f32 %v3074_v39, %v3626_v4 }
 0x155   : > { %v2219_v5 = vmax.f32 %v2155_v41, 0.0  ;;  %v2156_v6 = vadd.f32 %v3075_v42, %v3626_v4 }
 0x156   : > { %2285 = vst [vmem:[%s3633_s4 + $0xb0] sm:$0xff] %v2221_v3  ;;  %v2222_v56 = vmax.f32 %v2158_v55, 0.0 }
 0x157   : > { %2283 = vst [vmem:[%s3633_s4 + $0xa0] sm:$0xff] %v2219_v5  ;;  %v2220_v7 = vmax.f32 %v2156_v6, 0.0  ;;  %v3012_v43 = vpop.f32.mrb[24].mxu0 }
 0x158   : > { %2286 = vst [vmem:[%s3633_s4 + $0xb8] sm:$0xff] %v2222_v56  ;;  %v3076_v57 = vadd.f32 %v3012_v43, %v3607_v59  ;;  %v1905_v8 = vpop.f32.mrb[25].mxu0 }
 0x159   : > { %2284 = vst [vmem:[%s3633_s4 + $0xa8] sm:$0xff] %v2220_v7  ;;  %v3077_v58 = vadd.f32 %v1905_v8, %v3609_v60  ;;  %v3013_v9 = vpop.f32.mrb[26].mxu0 }
 0x15a   : > { %v2161_v44 = vadd.f32 %v3076_v57, %v3626_v4  ;;  %v3078_v10 = vadd.f32 %v3013_v9, %v3611_v61  ;;  %v1908_v11 = vpop.f32.mrb[27].mxu0 }
 0x15b   : > { %v2159_v45 = vadd.f32 %v3077_v58, %v3626_v4  ;;  %v3079_v12 = vadd.f32 %v1908_v11, %v3613_v62 }
 0x15c   : > { %v2225_v46 = vmax.f32 %v2161_v44, 0.0  ;;  %v2162_v59 = vadd.f32 %v3078_v10, %v3626_v4 }
 0x15d   : > { %v2223_v13 = vmax.f32 %v2159_v45, 0.0  ;;  %v2160_v14 = vadd.f32 %v3079_v12, %v3626_v4 }
 0x15e   : > { %2289 = vst [vmem:[%s3633_s4 + $0xd0] sm:$0xff] %v2225_v46  ;;  %v2226_v60 = vmax.f32 %v2162_v59, 0.0 }
 0x15f   : > { %2287 = vst [vmem:[%s3633_s4 + $0xc0] sm:$0xff] %v2223_v13  ;;  %v2224_v15 = vmax.f32 %v2160_v14, 0.0  ;;  %v3016_v16 = vpop.f32.mrb[28].mxu0 }
 0x160   : > { %2290 = vst [vmem:[%s3633_s4 + $0xd8] sm:$0xff] %v2226_v60  ;;  %v3080_v61 = vadd.f32 %v3016_v16, %v3615_v63  ;;  %v1921_v17 = vpop.f32.mrb[29].mxu0 }
 0x161   : > { %2288 = vst [vmem:[%s3633_s4 + $0xc8] sm:$0xff] %v2224_v15  ;;  %v3081_v62 = vadd.f32 %v1921_v17, %v3617_v0  ;;  %v3017_v18 = vpop.f32.mrb[30].mxu0 }
 0x162   : > { %v2165_v19 = vadd.f32 %v3080_v61, %v3626_v4  ;;  %v3082_v47 = vadd.f32 %v3017_v18, %v3619_v1  ;;  %v1924_v20 = vpop.f32.mrb[31].mxu0 }
 0x163   : > { %v2163_v21 = vadd.f32 %v3081_v62, %v3626_v4  ;;  %v3083_v48 = vadd.f32 %v1924_v20, %v3621_v2 }
 0x164   : > { %v2229_v22 = vmax.f32 %v2165_v19, 0.0  ;;  %v2166_v63 = vadd.f32 %v3082_v47, %v3626_v4 }
 0x165   : > { %v2227_v23 = vmax.f32 %v2163_v21, 0.0  ;;  %v2164_v49 = vadd.f32 %v3083_v48, %v3626_v4 }
 0x166   : > { %2293 = vst [vmem:[%s3633_s4 + $0xf0] sm:$0xff] %v2229_v22  ;;  %v2230_v0 = vmax.f32 %v2166_v63, 0.0 }
 0x167   : > { %v2954_v24 = vpop.f32.mrb[32].mxu1  ;;  %2291 = vst [vmem:[%s3633_s4 + $0xe0] sm:$0xff] %v2227_v23  ;;  %v2228_v50 = vmax.f32 %v2164_v49, 0.0  ;;  %v3020_v25 = vpop.f32.mrb[32].mxu0 }
 0x168   : > { %v1314_v26 = vpop.f32.mrb[33].mxu1  ;;  %2294 = vst [vmem:[%s3633_s4 + $0xf8] sm:$0xff] %v2230_v0  ;;  %v3084_v1 = vadd.f32 %v3020_v25, %v2954_v24  ;;  %v1937_v27 = vpop.f32.mrb[33].mxu0 }
 0x169   : > { %v2955_v28 = vpop.f32.mrb[34].mxu1  ;;  %2292 = vst [vmem:[%s3633_s4 + $0xe8] sm:$0xff] %v2228_v50  ;;  %v3085_v2 = vadd.f32 %v1937_v27, %v1314_v26  ;;  %v3021_v29 = vpop.f32.mrb[34].mxu0 }
 0x16a   : > { %v1317_v30 = vpop.f32.mrb[35].mxu1  ;;  %v2169_v31 = vadd.f32 %v3084_v1, %v3626_v4  ;;  %v3086_v51 = vadd.f32 %v3021_v29, %v2955_v28  ;;  %v1940_v32 = vpop.f32.mrb[35].mxu0 }
 0x16b   : > { %v2167_v33 = vadd.f32 %v3085_v2, %v3626_v4  ;;  %v3087_v52 = vadd.f32 %v1940_v32, %v1317_v30 }
 0x16c   : > { %v2233_v34 = vmax.f32 %v2169_v31, 0.0  ;;  %v2170_v35 = vadd.f32 %v3086_v51, %v3626_v4 }
 0x16d   : > { %v2231_v53 = vmax.f32 %v2167_v33, 0.0  ;;  %v2168_v36 = vadd.f32 %v3087_v52, %v3626_v4 }
 0x16e   : > { %2297 = vst [vmem:[%s3633_s4 + $0x110] sm:$0xff] %v2233_v34  ;;  %v2234_v54 = vmax.f32 %v2170_v35, 0.0 }
 0x16f   : > { %v2958_v37 = vpop.f32.mrb[36].mxu1  ;;  %2295 = vst [vmem:[%s3633_s4 + $0x100] sm:$0xff] %v2231_v53  ;;  %v2232_v38 = vmax.f32 %v2168_v36, 0.0  ;;  %v3024_v39 = vpop.f32.mrb[36].mxu0 }
 0x170   : > { %v1330_v40 = vpop.f32.mrb[37].mxu1  ;;  %2298 = vst [vmem:[%s3633_s4 + $0x118] sm:$0xff] %v2234_v54  ;;  %v3088_v41 = vadd.f32 %v3024_v39, %v2958_v37  ;;  %v1953_v42 = vpop.f32.mrb[37].mxu0 }
 0x171   : > { %v2959_v3 = vpop.f32.mrb[38].mxu1  ;;  %2296 = vst [vmem:[%s3633_s4 + $0x108] sm:$0xff] %v2232_v38  ;;  %v3089_v55 = vadd.f32 %v1953_v42, %v1330_v40  ;;  %v3025_v5 = vpop.f32.mrb[38].mxu0 }
 0x172   : > { %v1333_v6 = vpop.f32.mrb[39].mxu1  ;;  %v2173_v56 = vadd.f32 %v3088_v41, %v3626_v4  ;;  %v3090_v7 = vadd.f32 %v3025_v5, %v2959_v3  ;;  %v1956_v43 = vpop.f32.mrb[39].mxu0 }
 0x173   : > { %v2171_v57 = vadd.f32 %v3089_v55, %v3626_v4  ;;  %v3091_v8 = vadd.f32 %v1956_v43, %v1333_v6 }
 0x174   : > { %v2237_v58 = vmax.f32 %v2173_v56, 0.0  ;;  %v2174_v9 = vadd.f32 %v3090_v7, %v3626_v4 }
 0x175   : > { %v2235_v44 = vmax.f32 %v2171_v57, 0.0  ;;  %v2172_v10 = vadd.f32 %v3091_v8, %v3626_v4 }
 0x176   : > { %2301 = vst [vmem:[%s3633_s4 + $0x130] sm:$0xff] %v2237_v58  ;;  %v2238_v11 = vmax.f32 %v2174_v9, 0.0 }
 0x177   : > { %v2962_v45 = vpop.f32.mrb[40].mxu1  ;;  %2299 = vst [vmem:[%s3633_s4 + $0x120] sm:$0xff] %v2235_v44  ;;  %v2236_v12 = vmax.f32 %v2172_v10, 0.0  ;;  %v3028_v46 = vpop.f32.mrb[40].mxu0 }
 0x178   : > { %v1346_v59 = vpop.f32.mrb[41].mxu1  ;;  %2302 = vst [vmem:[%s3633_s4 + $0x138] sm:$0xff] %v2238_v11  ;;  %v3092_v13 = vadd.f32 %v3028_v46, %v2962_v45  ;;  %v1969_v14 = vpop.f32.mrb[41].mxu0 }
 0x179   : > { %v2963_v60 = vpop.f32.mrb[42].mxu1  ;;  %2300 = vst [vmem:[%s3633_s4 + $0x128] sm:$0xff] %v2236_v12  ;;  %v3093_v15 = vadd.f32 %v1969_v14, %v1346_v59  ;;  %v3029_v16 = vpop.f32.mrb[42].mxu0 }
 0x17a   : > { %v1349_v61 = vpop.f32.mrb[43].mxu1  ;;  %v2177_v17 = vadd.f32 %v3092_v13, %v3626_v4  ;;  %v3094_v62 = vadd.f32 %v3029_v16, %v2963_v60  ;;  %v1972_v18 = vpop.f32.mrb[43].mxu0 }
 0x17b   : > { %v2175_v19 = vadd.f32 %v3093_v15, %v3626_v4  ;;  %v3095_v47 = vadd.f32 %v1972_v18, %v1349_v61 }
 0x17c   : > { %v2241_v20 = vmax.f32 %v2177_v17, 0.0  ;;  %v2178_v21 = vadd.f32 %v3094_v62, %v3626_v4 }
 0x17d   : > { %v2239_v48 = vmax.f32 %v2175_v19, 0.0  ;;  %v2176_v22 = vadd.f32 %v3095_v47, %v3626_v4 }
 0x17e   : > { %2305 = vst [vmem:[%s3633_s4 + $0x150] sm:$0xff] %v2241_v20  ;;  %v2242_v63 = vmax.f32 %v2178_v21, 0.0 }
 0x17f   : > { %v2966_v23 = vpop.f32.mrb[44].mxu1  ;;  %2303 = vst [vmem:[%s3633_s4 + $0x140] sm:$0xff] %v2239_v48  ;;  %v2240_v49 = vmax.f32 %v2176_v22, 0.0  ;;  %v3032_v0 = vpop.f32.mrb[44].mxu0 }
 0x180   : > { %v1362_v24 = vpop.f32.mrb[45].mxu1  ;;  %2306 = vst [vmem:[%s3633_s4 + $0x158] sm:$0xff] %v2242_v63  ;;  %v3096_v50 = vadd.f32 %v3032_v0, %v2966_v23  ;;  %v1985_v25 = vpop.f32.mrb[45].mxu0 }
 0x181   : > { %v2967_v26 = vpop.f32.mrb[46].mxu1  ;;  %2304 = vst [vmem:[%s3633_s4 + $0x148] sm:$0xff] %v2240_v49  ;;  %v3097_v1 = vadd.f32 %v1985_v25, %v1362_v24  ;;  %v3033_v27 = vpop.f32.mrb[46].mxu0 }
 0x182   : > { %v1365_v28 = vpop.f32.mrb[47].mxu1  ;;  %v2181_v2 = vadd.f32 %v3096_v50, %v3626_v4  ;;  %v3098_v29 = vadd.f32 %v3033_v27, %v2967_v26  ;;  %v1988_v30 = vpop.f32.mrb[47].mxu0 }
 0x183   : > { %v2179_v31 = vadd.f32 %v3097_v1, %v3626_v4  ;;  %v3099_v51 = vadd.f32 %v1988_v30, %v1365_v28 }
 0x184   : > { %v2245_v32 = vmax.f32 %v2181_v2, 0.0  ;;  %v2182_v33 = vadd.f32 %v3098_v29, %v3626_v4 }
 0x185   : > { %v2243_v52 = vmax.f32 %v2179_v31, 0.0  ;;  %v2180_v34 = vadd.f32 %v3099_v51, %v3626_v4 }
 0x186   : > { %2309 = vst [vmem:[%s3633_s4 + $0x170] sm:$0xff] %v2245_v32  ;;  %v2246_v35 = vmax.f32 %v2182_v33, 0.0 }
 0x187   : > { %v2970_v53 = vpop.f32.mrb[48].mxu1  ;;  %2307 = vst [vmem:[%s3633_s4 + $0x160] sm:$0xff] %v2243_v52  ;;  %v2244_v36 = vmax.f32 %v2180_v34, 0.0  ;;  %v3036_v54 = vpop.f32.mrb[48].mxu0 }
 0x188   : > { %v1378_v37 = vpop.f32.mrb[49].mxu1  ;;  %2310 = vst [vmem:[%s3633_s4 + $0x178] sm:$0xff] %v2246_v35  ;;  %v3100_v38 = vadd.f32 %v3036_v54, %v2970_v53  ;;  %v2001_v39 = vpop.f32.mrb[49].mxu0 }
 0x189   : > { %v2971_v40 = vpop.f32.mrb[50].mxu1  ;;  %2308 = vst [vmem:[%s3633_s4 + $0x168] sm:$0xff] %v2244_v36  ;;  %v3101_v41 = vadd.f32 %v2001_v39, %v1378_v37  ;;  %v3037_v42 = vpop.f32.mrb[50].mxu0 }
 0x18a   : > { %v1381_v3 = vpop.f32.mrb[51].mxu1  ;;  %v2185_v55 = vadd.f32 %v3100_v38, %v3626_v4  ;;  %v3102_v5 = vadd.f32 %v3037_v42, %v2971_v40  ;;  %v2004_v6 = vpop.f32.mrb[51].mxu0 }
 0x18b   : > { %v2183_v56 = vadd.f32 %v3101_v41, %v3626_v4  ;;  %v3103_v7 = vadd.f32 %v2004_v6, %v1381_v3 }
 0x18c   : > { %v2249_v43 = vmax.f32 %v2185_v55, 0.0  ;;  %v2186_v57 = vadd.f32 %v3102_v5, %v3626_v4 }
 0x18d   : > { %v2247_v8 = vmax.f32 %v2183_v56, 0.0  ;;  %v2184_v58 = vadd.f32 %v3103_v7, %v3626_v4 }
 0x18e   : > { %2313 = vst [vmem:[%s3633_s4 + $0x190] sm:$0xff] %v2249_v43  ;;  %v2250_v9 = vmax.f32 %v2186_v57, 0.0 }
 0x18f   : > { %v2974_v44 = vpop.f32.mrb[52].mxu1  ;;  %2311 = vst [vmem:[%s3633_s4 + $0x180] sm:$0xff] %v2247_v8  ;;  %v2248_v10 = vmax.f32 %v2184_v58, 0.0  ;;  %v3040_v11 = vpop.f32.mrb[52].mxu0 }
 0x190   : > { %v1394_v45 = vpop.f32.mrb[53].mxu1  ;;  %2314 = vst [vmem:[%s3633_s4 + $0x198] sm:$0xff] %v2250_v9  ;;  %v3104_v12 = vadd.f32 %v3040_v11, %v2974_v44  ;;  %v2017_v46 = vpop.f32.mrb[53].mxu0 }
 0x191   : > { %v2975_v59 = vpop.f32.mrb[54].mxu1  ;;  %2312 = vst [vmem:[%s3633_s4 + $0x188] sm:$0xff] %v2248_v10  ;;  %v3105_v13 = vadd.f32 %v2017_v46, %v1394_v45  ;;  %v3041_v14 = vpop.f32.mrb[54].mxu0 }
 0x192   : > { %v1397_v60 = vpop.f32.mrb[55].mxu1  ;;  %v2189_v15 = vadd.f32 %v3104_v12, %v3626_v4  ;;  %v3106_v16 = vadd.f32 %v3041_v14, %v2975_v59  ;;  %v2020_v61 = vpop.f32.mrb[55].mxu0 }
 0x193   : > { %v2187_v17 = vadd.f32 %v3105_v13, %v3626_v4  ;;  %v3107_v62 = vadd.f32 %v2020_v61, %v1397_v60 }
 0x194   : > { %v2253_v18 = vmax.f32 %v2189_v15, 0.0  ;;  %v2190_v19 = vadd.f32 %v3106_v16, %v3626_v4 }
 0x195   : > { %v2251_v47 = vmax.f32 %v2187_v17, 0.0  ;;  %v2188_v20 = vadd.f32 %v3107_v62, %v3626_v4 }
 0x196   : > { %2317 = vst [vmem:[%s3633_s4 + $0x1b0] sm:$0xff] %v2253_v18  ;;  %v2254_v21 = vmax.f32 %v2190_v19, 0.0 }
 0x197   : > { %v2978_v48 = vpop.f32.mrb[56].mxu1  ;;  %2315 = vst [vmem:[%s3633_s4 + $0x1a0] sm:$0xff] %v2251_v47  ;;  %v2252_v22 = vmax.f32 %v2188_v20, 0.0  ;;  %v3044_v63 = vpop.f32.mrb[56].mxu0 }
 0x198   : > { %v1410_v23 = vpop.f32.mrb[57].mxu1  ;;  %2318 = vst [vmem:[%s3633_s4 + $0x1b8] sm:$0xff] %v2254_v21  ;;  %v3108_v49 = vadd.f32 %v3044_v63, %v2978_v48  ;;  %v2033_v0 = vpop.f32.mrb[57].mxu0 }
 0x199   : > { %v2979_v24 = vpop.f32.mrb[58].mxu1  ;;  %2316 = vst [vmem:[%s3633_s4 + $0x1a8] sm:$0xff] %v2252_v22  ;;  %v3109_v50 = vadd.f32 %v2033_v0, %v1410_v23  ;;  %v3045_v25 = vpop.f32.mrb[58].mxu0 }
 0x19a   : > { %v1413_v26 = vpop.f32.mrb[59].mxu1  ;;  %v2193_v1 = vadd.f32 %v3108_v49, %v3626_v4  ;;  %v3110_v27 = vadd.f32 %v3045_v25, %v2979_v24  ;;  %v2036_v28 = vpop.f32.mrb[59].mxu0 }
 0x19b   : > { %v2191_v2 = vadd.f32 %v3109_v50, %v3626_v4  ;;  %v3111_v29 = vadd.f32 %v2036_v28, %v1413_v26 }
 0x19c   : > { %v2257_v30 = vmax.f32 %v2193_v1, 0.0  ;;  %v2194_v31 = vadd.f32 %v3110_v27, %v3626_v4 }
 0x19d   : > { %v2255_v51 = vmax.f32 %v2191_v2, 0.0  ;;  %v2192_v32 = vadd.f32 %v3111_v29, %v3626_v4 }
 0x19e   : > { %2321 = vst [vmem:[%s3633_s4 + $0x1d0] sm:$0xff] %v2257_v30  ;;  %v2258_v33 = vmax.f32 %v2194_v31, 0.0 }
 0x19f   : > { %v2982_v52 = vpop.f32.mrb[60].mxu1  ;;  %2319 = vst [vmem:[%s3633_s4 + $0x1c0] sm:$0xff] %v2255_v51  ;;  %v2256_v34 = vmax.f32 %v2192_v32, 0.0  ;;  %v3048_v35 = vpop.f32.mrb[60].mxu0 }
 0x1a0   : > { %v1426_v53 = vpop.f32.mrb[61].mxu1  ;;  %2322 = vst [vmem:[%s3633_s4 + $0x1d8] sm:$0xff] %v2258_v33  ;;  %v3112_v36 = vadd.f32 %v3048_v35, %v2982_v52  ;;  %v2049_v54 = vpop.f32.mrb[61].mxu0 }
 0x1a1   : > { %v2983_v37 = vpop.f32.mrb[62].mxu1  ;;  %2320 = vst [vmem:[%s3633_s4 + $0x1c8] sm:$0xff] %v2256_v34  ;;  %v3113_v38 = vadd.f32 %v2049_v54, %v1426_v53  ;;  %v3049_v39 = vpop.f32.mrb[62].mxu0 }
 0x1a2   : > { %v1429_v40 = vpop.f32.mrb[63].mxu1  ;;  %v2197_v41 = vadd.f32 %v3112_v36, %v3626_v4  ;;  %v3114_v42 = vadd.f32 %v3049_v39, %v2983_v37  ;;  %v2052_v3 = vpop.f32.mrb[63].mxu0 }
 0x1a3   : > { %v2195_v55 = vadd.f32 %v3113_v38, %v3626_v4  ;;  %v3115_v5 = vadd.f32 %v2052_v3, %v1429_v40 }
 0x1a4   : > { %v2261_v6 = vmax.f32 %v2197_v41, 0.0  ;;  %v2198_v56 = vadd.f32 %v3114_v42, %v3626_v4 }
 0x1a5   : > { %v2259_v7 = vmax.f32 %v2195_v55, 0.0  ;;  %v2196_v43 = vadd.f32 %v3115_v5, %v3626_v4 }
 0x1a6   : > { %2325 = vst [vmem:[%s3633_s4 + $0x1f0] sm:$0xff] %v2261_v6  ;;  %v2262_v57 = vmax.f32 %v2198_v56, 0.0 }
 0x1a7   : > { %2323 = vst [vmem:[%s3633_s4 + $0x1e0] sm:$0xff] %v2259_v7  ;;  %v2260_v8 = vmax.f32 %v2196_v43, 0.0 }
 0x1a8   : > { %2326 = vst [vmem:[%s3633_s4 + $0x1f8] sm:$0xff] %v2262_v57 }
 0x1a9   : > { %2324 = vst [vmem:[%s3633_s4 + $0x1e8] sm:$0xff] %v2260_v8 }
 0x1aa PF: > { %s13_s14 = sadd.s32 1, %s3326_s14   ;;  %s3799_s12 = smov %s3322_s13 }
 0x1ab   : > { %p10_p5 = scmp.ge.s32.totalorder %s13_s14, 4   ;;  %s3800_s13 = smov %s3802_s15 }
 0x1ad   :  { %12 = sbr.rel (!%p10_p5) target bundleno = 2 (0x2), region = 67 }

// kernel: conv_bn_relu2d.2
= control target key start
LH: loop header
LB: loop body
LE: loop exit
PB: predicated region body
PF: predicated region fallthrough
CT: control target
= control target key end

     0   :  { %s4585_s9 = smov 0   ;;  %s4587_s10 = smov 0   ;;  %s4888_s0 = inlined_call_operand.vmem [shape: bf16[2,576,16], index: 0, kind: input, shape index: {}]   ;;  %s4889_s1 = inlined_call_operand.vmem [shape: bf16[3,16,128], index: 1, kind: input, shape index: {}]   ;;  %s4890_s2 = inlined_call_operand.vmem [shape: f32[2,1,2,128], index: 2, kind: output, shape index: {}]  }
   0x1   :  { %s4589_s11 = smov 0  }
   0x2 LB: > { %s24_s12 = sadd.s32 1, %s4564_s10  ;;  %p3663_p0 = scmp.ge.s32.totalorder %s4568_s11, 1  ;;  %s4568_s11 = sphi %s4589_s11, %s12_s11   ;;  %s4564_s10 = sphi %s4587_s10, %s4892_s10   ;;  %s4560_s9 = sphi %s4585_s9, %s4891_s9  }
   0x3   : > { %p26_p1 = scmp.ge.s32.totalorder %s24_s12, 2  ;;  %p126_p2 = scmp.lt.s32.totalorder %s4568_s11, 3 }
   0x5   : > { %s4894_s12 = smov (%p26_p1, %s24_s12), 0  ;;  %p127_p3 = pnand %p3663_p0, %p126_p2 }
   0x6   : > { %v4447_v0 = vld [vmem:[%s4889_s1 + $0x8] sm:$0xff] (!%p127_p3)   ;;  %p150_p4 = scmp.lt.s32.totalorder (!%p127_p3), %s4560_s9, 1  ;;  %v4448_v1 = vld [vmem:[%s4889_s1] sm:$0xff] (!%p127_p3)   ;;  %v4451_v2 = vld [vmem:[%s4889_s1 + $0x10] sm:$0xff] (!%p127_p3)   ;;  %vm472_vm0 = vcmask (!%p127_p3), 130048  }
   0x7   : > { %130 = sbr.rel (%p127_p3) target bundleno = 442 (0x1ba), region = 28  ;;  %4094 = vmatprep.subr.bf16.mxu1 (!%p127_p3), %v4447_v0  ;;  %4160 = vmatprep.subr.bf16.mxu0 (!%p127_p3), %v4448_v1 }
   0x8   : > { %4095 = vmatpush3.bf16.msra.mxu1 (!%p127_p3), %v4447_v0  ;;  %4161 = vmatpush3.bf16.msra.mxu0 (!%p127_p3), %v4448_v1 }
   0x9   : > { %4292 = vmatprep.subr.bf16.mxu1 (!%p127_p3), %v4448_v1  ;;  %4226 = vmatprep.subr.bf16.mxu0 (!%p127_p3), %v4451_v2 }
   0xe   : > { %s4896_s9 = smov (!%p150_p4, %s4560_s9), 1 }
   0xf   : > { %s4422_s19 = smul.u32 288, %s4896_s9  ;;  %s3665_s23 = sshll.u32 %s4896_s9, 1 }
  0x10   : > { %s161_s26 = scalar_lea.vmem %s4890_s2, %s3665_s23 }
  0x11   : > { %s4618_s22 = scalar_lea.vmem %s4888_s0, %s4422_s19 }
  0x12   : > { %v4449_v3 = vld [vmem:[%s4618_s22 + $0x10] sm:$0xff]   ;;  %v4450_v4 = vld [vmem:[%s4618_s22] sm:$0xff]   ;;  %v4452_v5 = vld [vmem:[%s4618_s22 + $0x18] sm:$0xff]  }
  0x13   : > { %4096 = vmatprep.mubr.msk.bf16.mxu1 %vm472_vm0, %v4449_v3  ;;  %4162 = vmatprep.mubr.msk.bf16.mxu0 %vm472_vm0, %v4450_v4  ;;  %v4453_v6 = vld [vmem:[%s4618_s22 + $0x8] sm:$0xff]   ;;  %v4454_v7 = vld [vmem:[%s4618_s22 + $0x20] sm:$0xff]   ;;  %v4455_v8 = vld [vmem:[%s4618_s22 + $0x10] sm:$0xff]  }
  0x14   : > { %4097 = vmatmul.mubr.msk.bf16.vlgmr.msra.gmra.mrb[0].mxu1 %vm472_vm0, %v4452_v5  ;;  %4163 = vmatmul.mubr.msk.bf16.vlgmr.msra.gmra.mrb[0].mxu0 %vm472_vm0, %v4453_v6  ;;  %v4456_v9 = vld [vmem:[%s4618_s22 + $0x28] sm:$0xff]   ;;  %v4457_v10 = vld [vmem:[%s4618_s22 + $0x18] sm:$0xff]   ;;  %v4458_v11 = vld [vmem:[%s4618_s22 + $0x30] sm:$0xff]  }
  0x15   : > { %4293 = vmatpush3.bf16.msra.mxu1 %v4448_v1  ;;  %4227 = vmatpush3.bf16.msra.mxu0 %v4451_v2  ;;  %v4459_v12 = vld [vmem:[%s4618_s22 + $0x20] sm:$0xff]   ;;  %v4460_v13 = vld [vmem:[%s4618_s22 + $0x38] sm:$0xff]   ;;  %v4461_v14 = vld [vmem:[%s4618_s22 + $0x28] sm:$0xff]  }
  0x16   : > { %4100 = vmatprep.mubr.msk.bf16.mxu1 %vm472_vm0, %v4454_v7  ;;  %4166 = vmatprep.mubr.msk.bf16.mxu0 %vm472_vm0, %v4455_v8  ;;  %v4462_v15 = vld [vmem:[%s4618_s22 + $0x40] sm:$0xff]   ;;  %v4463_v16 = vld [vmem:[%s4618_s22 + $0x30] sm:$0xff]   ;;  %v4464_v17 = vld [vmem:[%s4618_s22 + $0x48] sm:$0xff]  }
  0x17   : > { %v4465_v18 = vld [vmem:[%s4618_s22 + $0x38] sm:$0xff]   ;;  %v4466_v19 = vld [vmem:[%s4618_s22 + $0x50] sm:$0xff]   ;;  %v4467_v20 = vld [vmem:[%s4618_s22 + $0x40] sm:$0xff]  }
  0x18   : > { %v4468_v21 = vld [vmem:[%s4618_s22 + $0x58] sm:$0xff]   ;;  %v4469_v22 = vld [vmem:[%s4618_s22 + $0x48] sm:$0xff]   ;;  %v4470_v23 = vld [vmem:[%s4618_s22 + $0x60] sm:$0xff]  }
  0x19   : > { %v4471_v24 = vld [vmem:[%s4618_s22 + $0x50] sm:$0xff]   ;;  %v4472_v25 = vld [vmem:[%s4618_s22 + $0x68] sm:$0xff]   ;;  %v4473_v26 = vld [vmem:[%s4618_s22 + $0x58] sm:$0xff]  }
  0x1a   : > { %v4474_v27 = vld [vmem:[%s4618_s22 + $0x70] sm:$0xff]   ;;  %v4475_v28 = vld [vmem:[%s4618_s22 + $0x60] sm:$0xff]   ;;  %v4476_v29 = vld [vmem:[%s4618_s22 + $0x78] sm:$0xff]  }
  0x1b   : > { %v4477_v30 = vld [vmem:[%s4618_s22 + $0x68] sm:$0xff]   ;;  %v4478_v31 = vld [vmem:[%s4618_s22 + $0x80] sm:$0xff]   ;;  %v4479_v32 = vld [vmem:[%s4618_s22 + $0x70] sm:$0xff]  }
  0x1c   : > { %4101 = vmatmul.mubr.msk.bf16.gmra.mrb[4].mxu1 %vm472_vm0, %v4456_v9  ;;  %4167 = vmatmul.mubr.msk.bf16.gmra.mrb[4].mxu0 %vm472_vm0, %v4457_v10  ;;  %v4480_v33 = vld [vmem:[%s4618_s22 + $0x88] sm:$0xff]   ;;  %v4481_v34 = vld [vmem:[%s4618_s22 + $0x78] sm:$0xff]   ;;  %v4482_v35 = vld [vmem:[%s4618_s22 + $0x90] sm:$0xff]  }
  0x1d   : > { %4104 = vmatprep.mubr.msk.bf16.mxu1 %vm472_vm0, %v4458_v11  ;;  %4170 = vmatprep.mubr.msk.bf16.mxu0 %vm472_vm0, %v4459_v12  ;;  %v4483_v36 = vld [vmem:[%s4618_s22 + $0x20] sm:$0xff]   ;;  %v4484_v37 = vld [vmem:[%s4618_s22 + $0x98] sm:$0xff]   ;;  %v4485_v38 = vld [vmem:[%s4618_s22 + $0x28] sm:$0xff]  }
  0x1e   : > { %v4486_v39 = vld [vmem:[%s4618_s22 + $0xa0] sm:$0xff]   ;;  %v4487_v40 = vld [vmem:[%s4618_s22 + $0x30] sm:$0xff]   ;;  %v4488_v41 = vld [vmem:[%s4618_s22 + $0xa8] sm:$0xff]  }
  0x1f   : > { %v4489_v42 = vld [vmem:[%s4618_s22 + $0x38] sm:$0xff]   ;;  %v4490_v43 = vld [vmem:[%s4618_s22 + $0xb0] sm:$0xff]   ;;  %v4491_v44 = vld [vmem:[%s4618_s22 + $0x40] sm:$0xff]  }
  0x20   : > { %v4492_v45 = vld [vmem:[%s4618_s22 + $0xb8] sm:$0xff]   ;;  %v4493_v46 = vld [vmem:[%s4618_s22 + $0x48] sm:$0xff]   ;;  %v4494_v47 = vld [vmem:[%s4618_s22 + $0xc0] sm:$0xff]  }
  0x21   : > { %v4495_v48 = vld [vmem:[%s4618_s22 + $0x50] sm:$0xff]   ;;  %v4496_v49 = vld [vmem:[%s4618_s22 + $0xc8] sm:$0xff]   ;;  %v4497_v50 = vld [vmem:[%s4618_s22 + $0x58] sm:$0xff]  }
  0x22   : > { %v4498_v51 = vld [vmem:[%s4618_s22 + $0xd0] sm:$0xff]   ;;  %v4499_v52 = vld [vmem:[%s4618_s22 + $0x60] sm:$0xff]   ;;  %v4500_v53 = vld [vmem:[%s4618_s22 + $0xd8] sm:$0xff]  }
  0x23   : > { %v4501_v54 = vld [vmem:[%s4618_s22 + $0x68] sm:$0xff]   ;;  %v4502_v55 = vld [vmem:[%s4618_s22 + $0xe0] sm:$0xff]   ;;  %v4503_v56 = vld [vmem:[%s4618_s22 + $0x70] sm:$0xff]  }
  0x24   : > { %4105 = vmatmul.mubr.msk.bf16.gmra.mrb[8].mxu1 %vm472_vm0, %v4460_v13  ;;  %4171 = vmatmul.mubr.msk.bf16.gmra.mrb[8].mxu0 %vm472_vm0, %v4461_v14  ;;  %v4504_v57 = vld [vmem:[%s4618_s22 + $0xe8] sm:$0xff]   ;;  %v4505_v58 = vld [vmem:[%s4618_s22 + $0x78] sm:$0xff]   ;;  %v4506_v59 = vld [vmem:[%s4618_s22 + $0xf0] sm:$0xff]  }
  0x25   : > { %4108 = vmatprep.mubr.msk.bf16.mxu1 %vm472_vm0, %v4462_v15  ;;  %4174 = vmatprep.mubr.msk.bf16.mxu0 %vm472_vm0, %v4463_v16  ;;  %v4507_v60 = vld [vmem:[%s4618_s22 + $0x80] sm:$0xff]   ;;  %v4508_v61 = vld [vmem:[%s4618_s22 + $0xf8] sm:$0xff]   ;;  %v4509_v62 = vld [vmem:[%s4618_s22 + $0x88] sm:$0xff]  }
  0x26   : > { %v4510_v63 = vld [vmem:[%s4618_s22 + $0x100] sm:$0xff]   ;;  %v4511_v0 = vld [vmem:[%s4618_s22 + $0x90] sm:$0xff]   ;;  %v4512_v1 = vld [vmem:[%s4618_s22 + $0x108] sm:$0xff]  }
  0x27   : > { %v4513_v2 = vld [vmem:[%s4618_s22 + $0x98] sm:$0xff]   ;;  %v4514_v3 = vld [vmem:[%s4618_s22 + $0x80] sm:$0xff]   ;;  %v4516_v5 = vld [vmem:[%s4618_s22 + $0x88] sm:$0xff]  }
  0x28   : > { %v4515_v4 = vld [vmem:[%s4618_s22 + $0xa0] sm:$0xff]   ;;  %v4517_v6 = vld [vmem:[%s4618_s22 + $0xa8] sm:$0xff]   ;;  %v4518_v7 = vld [vmem:[%s4618_s22 + $0x90] sm:$0xff]  }
  0x29   : > { %v4519_v8 = vld [vmem:[%s4618_s22 + $0xb0] sm:$0xff]   ;;  %v4520_v9 = vld [vmem:[%s4618_s22 + $0x98] sm:$0xff]   ;;  %v4522_v11 = vld [vmem:[%s4618_s22 + $0xa0] sm:$0xff]  }
  0x2a   : > { %v4521_v10 = vld [vmem:[%s4618_s22 + $0xb8] sm:$0xff]   ;;  %v4523_v12 = vld [vmem:[%s4618_s22 + $0xc0] sm:$0xff]   ;;  %v4524_v13 = vld [vmem:[%s4618_s22 + $0xa8] sm:$0xff]  }
  0x2b   : > { %v4525_v14 = vld [vmem:[%s4618_s22 + $0xc8] sm:$0xff]   ;;  %v4526_v15 = vld [vmem:[%s4618_s22 + $0xb0] sm:$0xff]  }
  0x2c   : > { %4109 = vmatmul.mubr.msk.bf16.gmra.mrb[12].mxu1 %vm472_vm0, %v4464_v17  ;;  %4175 = vmatmul.mubr.msk.bf16.gmra.mrb[12].mxu0 %vm472_vm0, %v4465_v18  ;;  %v4527_v16 = vld [vmem:[%s4618_s22 + $0xd0] sm:$0xff]   ;;  %v4528_v17 = vld [vmem:[%s4618_s22 + $0xb8] sm:$0xff]  }
  0x2d   : > { %4112 = vmatprep.mubr.msk.bf16.mxu1 %vm472_vm0, %v4466_v19  ;;  %4178 = vmatprep.mubr.msk.bf16.mxu0 %vm472_vm0, %v4467_v20  ;;  %v4529_v18 = vld [vmem:[%s4618_s22 + $0xd8] sm:$0xff]   ;;  %v4530_v19 = vld [vmem:[%s4618_s22 + $0xc0] sm:$0xff]  }
  0x2e   : > { %v4531_v20 = vld [vmem:[%s4618_s22 + $0xe0] sm:$0xff]  }
  0x34   : > { %4113 = vmatmul.mubr.msk.bf16.gmra.mrb[16].mxu1 %vm472_vm0, %v4468_v21  ;;  %4179 = vmatmul.mubr.msk.bf16.gmra.mrb[16].mxu0 %vm472_vm0, %v4469_v22  ;;  %v4532_v21 = vld [vmem:[%s4618_s22 + $0xc8] sm:$0xff]  }
  0x35   : > { %4116 = vmatprep.mubr.msk.bf16.mxu1 %vm472_vm0, %v4470_v23  ;;  %4182 = vmatprep.mubr.msk.bf16.mxu0 %vm472_vm0, %v4471_v24  ;;  %v4533_v22 = vld [vmem:[%s4618_s22 + $0xe8] sm:$0xff]   ;;  %v4534_v23 = vld [vmem:[%s4618_s22 + $0xd0] sm:$0xff]  }
  0x36   : > { %v4535_v24 = vld [vmem:[%s4618_s22 + $0xf0] sm:$0xff]  }
  0x3c   : > { %4117 = vmatmul.mubr.msk.bf16.gmra.mrb[20].mxu1 %vm472_vm0, %v4472_v25  ;;  %4183 = vmatmul.mubr.msk.bf16.gmra.mrb[20].mxu0 %vm472_vm0, %v4473_v26  ;;  %v4536_v25 = vld [vmem:[%s4618_s22 + $0xd8] sm:$0xff]  }
  0x3d   : > { %4120 = vmatprep.mubr.msk.bf16.mxu1 %vm472_vm0, %v4474_v27  ;;  %4186 = vmatprep.mubr.msk.bf16.mxu0 %vm472_vm0, %v4475_v28  ;;  %v4537_v26 = vld [vmem:[%s4618_s22 + $0xf8] sm:$0xff]   ;;  %v4538_v27 = vld [vmem:[%s4618_s22 + $0xe0] sm:$0xff]  }
  0x3e   : > { %v4539_v28 = vld [vmem:[%s4618_s22 + $0x100] sm:$0xff]  }
  0x44   : > { %4121 = vmatmul.mubr.msk.bf16.gmra.mrb[24].mxu1 %vm472_vm0, %v4476_v29  ;;  %4187 = vmatmul.mubr.msk.bf16.gmra.mrb[24].mxu0 %vm472_vm0, %v4477_v30  ;;  %v4540_v29 = vld [vmem:[%s4618_s22 + $0xe8] sm:$0xff]  }
  0x45   : > { %4124 = vmatprep.mubr.msk.bf16.mxu1 %vm472_vm0, %v4478_v31  ;;  %4190 = vmatprep.mubr.msk.bf16.mxu0 %vm472_vm0, %v4479_v32  ;;  %v4541_v30 = vld [vmem:[%s4618_s22 + $0x108] sm:$0xff]   ;;  %v4542_v31 = vld [vmem:[%s4618_s22 + $0xf0] sm:$0xff]  }
  0x46   : > { %v4543_v32 = vld [vmem:[%s4618_s22 + $0x110] sm:$0xff]  }
  0x4c   : > { %4125 = vmatmul.mubr.msk.bf16.gmra.mrb[28].mxu1 %vm472_vm0, %v4480_v33  ;;  %4191 = vmatmul.mubr.msk.bf16.gmra.mrb[28].mxu0 %vm472_vm0, %v4481_v34  ;;  %v4544_v33 = vld [vmem:[%s4618_s22 + $0xf8] sm:$0xff]  }
  0x4d   : > { %4128 = vmatprep.mubr.msk.bf16.mxu1 %vm472_vm0, %v4482_v35  ;;  %4228 = vmatprep.mubr.msk.bf16.mxu0 %vm472_vm0, %v4483_v36  ;;  %v4545_v34 = vld [vmem:[%s4618_s22 + $0x118] sm:$0xff]  }
  0x54   : > { %4129 = vmatmul.mubr.msk.bf16.gmra.mrb[32].mxu1 %vm472_vm0, %v4484_v37  ;;  %4229 = vmatmul.mubr.msk.bf16.vlgmr.msra.gmra.mrb[0].mxu0 %vm472_vm0, %v4485_v38 }
  0x55   : > { %4132 = vmatprep.mubr.msk.bf16.mxu1 %vm472_vm0, %v4486_v39  ;;  %4232 = vmatprep.mubr.msk.bf16.mxu0 %vm472_vm0, %v4487_v40 }
  0x5c   : > { %4133 = vmatmul.mubr.msk.bf16.gmra.mrb[36].mxu1 %vm472_vm0, %v4488_v41  ;;  %4233 = vmatmul.mubr.msk.bf16.gmra.mrb[4].mxu0 %vm472_vm0, %v4489_v42 }
  0x5d   : > { %4136 = vmatprep.mubr.msk.bf16.mxu1 %vm472_vm0, %v4490_v43  ;;  %4236 = vmatprep.mubr.msk.bf16.mxu0 %vm472_vm0, %v4491_v44 }
  0x64   : > { %4137 = vmatmul.mubr.msk.bf16.gmra.mrb[40].mxu1 %vm472_vm0, %v4492_v45  ;;  %4237 = vmatmul.mubr.msk.bf16.gmra.mrb[8].mxu0 %vm472_vm0, %v4493_v46 }
  0x65   : > { %4140 = vmatprep.mubr.msk.bf16.mxu1 %vm472_vm0, %v4494_v47  ;;  %4240 = vmatprep.mubr.msk.bf16.mxu0 %vm472_vm0, %v4495_v48 }
  0x6c   : > { %4141 = vmatmul.mubr.msk.bf16.gmra.mrb[44].mxu1 %vm472_vm0, %v4496_v49  ;;  %4241 = vmatmul.mubr.msk.bf16.gmra.mrb[12].mxu0 %vm472_vm0, %v4497_v50 }
  0x6d   : > { %4144 = vmatprep.mubr.msk.bf16.mxu1 %vm472_vm0, %v4498_v51  ;;  %4244 = vmatprep.mubr.msk.bf16.mxu0 %vm472_vm0, %v4499_v52 }
  0x74   : > { %4145 = vmatmul.mubr.msk.bf16.gmra.mrb[48].mxu1 %vm472_vm0, %v4500_v53  ;;  %4245 = vmatmul.mubr.msk.bf16.gmra.mrb[16].mxu0 %vm472_vm0, %v4501_v54 }
  0x75   : > { %4148 = vmatprep.mubr.msk.bf16.mxu1 %vm472_vm0, %v4502_v55  ;;  %4248 = vmatprep.mubr.msk.bf16.mxu0 %vm472_vm0, %v4503_v56 }
  0x7c   : > { %4149 = vmatmul.mubr.msk.bf16.gmra.mrb[52].mxu1 %vm472_vm0, %v4504_v57  ;;  %4249 = vmatmul.mubr.msk.bf16.gmra.mrb[20].mxu0 %vm472_vm0, %v4505_v58 }
  0x7d   : > { %4152 = vmatprep.mubr.msk.bf16.mxu1 %vm472_vm0, %v4506_v59  ;;  %4252 = vmatprep.mubr.msk.bf16.mxu0 %vm472_vm0, %v4507_v60 }
  0x84   : > { %4153 = vmatmul.mubr.msk.bf16.gmra.mrb[56].mxu1 %vm472_vm0, %v4508_v61  ;;  %4253 = vmatmul.mubr.msk.bf16.gmra.mrb[24].mxu0 %vm472_vm0, %v4509_v62 }
  0x85   : > { %4156 = vmatprep.mubr.msk.bf16.mxu1 %vm472_vm0, %v4510_v63  ;;  %4256 = vmatprep.mubr.msk.bf16.mxu0 %vm472_vm0, %v4511_v0 }
  0x8c   : > { %4157 = vmatmul.mubr.msk.bf16.gmra.mrb[60].mxu1 %vm472_vm0, %v4512_v1  ;;  %4257 = vmatmul.mubr.msk.bf16.gmra.mrb[28].mxu0 %vm472_vm0, %v4513_v2 }
  0x8d   : > { %4194 = vmatprep.mubr.msk.bf16.mxu1 %vm472_vm0, %v4514_v3  ;;  %4260 = vmatprep.mubr.msk.bf16.mxu0 %vm472_vm0, %v4515_v4 }
  0x94   : > { %4195 = vmatmul.mubr.msk.bf16.vlgmr.msra.gmra.mrb[32].mxu1 %vm472_vm0, %v4516_v5  ;;  %4261 = vmatmul.mubr.msk.bf16.gmra.mrb[32].mxu0 %vm472_vm0, %v4517_v6 }
  0x95   : > { %4198 = vmatprep.mubr.msk.bf16.mxu1 %vm472_vm0, %v4518_v7  ;;  %4264 = vmatprep.mubr.msk.bf16.mxu0 %vm472_vm0, %v4519_v8 }
  0x9c   : > { %4199 = vmatmul.mubr.msk.bf16.gmra.mrb[36].mxu1 %vm472_vm0, %v4520_v9  ;;  %4265 = vmatmul.mubr.msk.bf16.gmra.mrb[36].mxu0 %vm472_vm0, %v4521_v10 }
  0x9d   : > { %4202 = vmatprep.mubr.msk.bf16.mxu1 %vm472_vm0, %v4522_v11  ;;  %4268 = vmatprep.mubr.msk.bf16.mxu0 %vm472_vm0, %v4523_v12 }
  0xa4   : > { %4203 = vmatmul.mubr.msk.bf16.gmra.mrb[40].mxu1 %vm472_vm0, %v4524_v13  ;;  %4269 = vmatmul.mubr.msk.bf16.gmra.mrb[40].mxu0 %vm472_vm0, %v4525_v14 }
  0xa5   : > { %4206 = vmatprep.mubr.msk.bf16.mxu1 %vm472_vm0, %v4526_v15  ;;  %4272 = vmatprep.mubr.msk.bf16.mxu0 %vm472_vm0, %v4527_v16 }
  0xac   : > { %4207 = vmatmul.mubr.msk.bf16.gmra.mrb[44].mxu1 %vm472_vm0, %v4528_v17  ;;  %4273 = vmatmul.mubr.msk.bf16.gmra.mrb[44].mxu0 %vm472_vm0, %v4529_v18 }
  0xad   : > { %4210 = vmatprep.mubr.msk.bf16.mxu1 %vm472_vm0, %v4530_v19  ;;  %4276 = vmatprep.mubr.msk.bf16.mxu0 %vm472_vm0, %v4531_v20 }
  0xb4   : > { %4211 = vmatmul.mubr.msk.bf16.gmra.mrb[48].mxu1 %vm472_vm0, %v4532_v21  ;;  %4277 = vmatmul.mubr.msk.bf16.gmra.mrb[48].mxu0 %vm472_vm0, %v4533_v22 }
  0xb5   : > { %4214 = vmatprep.mubr.msk.bf16.mxu1 %vm472_vm0, %v4534_v23  ;;  %4280 = vmatprep.mubr.msk.bf16.mxu0 %vm472_vm0, %v4535_v24 }
  0xbc   : > { %4215 = vmatmul.mubr.msk.bf16.gmra.mrb[52].mxu1 %vm472_vm0, %v4536_v25  ;;  %4281 = vmatmul.mubr.msk.bf16.gmra.mrb[52].mxu0 %vm472_vm0, %v4537_v26 }
  0xbd   : > { %4218 = vmatprep.mubr.msk.bf16.mxu1 %vm472_vm0, %v4538_v27  ;;  %4284 = vmatprep.mubr.msk.bf16.mxu0 %vm472_vm0, %v4539_v28 }
  0xc4   : > { %4219 = vmatmul.mubr.msk.bf16.gmra.mrb[56].mxu1 %vm472_vm0, %v4540_v29  ;;  %4285 = vmatmul.mubr.msk.bf16.gmra.mrb[56].mxu0 %vm472_vm0, %v4541_v30 }
  0xc5   : > { %4222 = vmatprep.mubr.msk.bf16.mxu1 %vm472_vm0, %v4542_v31  ;;  %4288 = vmatprep.mubr.msk.bf16.mxu0 %vm472_vm0, %v4543_v32 }
  0xcc   : > { %4223 = vmatmul.mubr.msk.bf16.gmra.mrb[60].mxu1 %vm472_vm0, %v4544_v33  ;;  %4289 = vmatmul.mubr.msk.bf16.gmra.mrb[60].mxu0 %vm472_vm0, %v4545_v34 }
  0xe7   : > { %v4098_v35 = vpop.f32.mrb[0].mxu1 }
  0xe8   : > { %v603_v36 = vpop.f32.mrb[1].mxu1 }
  0xe9   : > { %v4099_v37 = vpop.f32.mrb[2].mxu1 }
  0xea   : > { %v606_v38 = vpop.f32.mrb[3].mxu1 }
  0xef   : > { %v4102_v39 = vpop.f32.mrb[4].mxu1 }
  0xf0   : > { %v619_v40 = vpop.f32.mrb[5].mxu1 }
  0xf1   : > { %v4103_v41 = vpop.f32.mrb[6].mxu1 }
  0xf2   : > { %v622_v42 = vpop.f32.mrb[7].mxu1 }
  0xf7   : > { %v4106_v43 = vpop.f32.mrb[8].mxu1 }
  0xf8   : > { %v635_v44 = vpop.f32.mrb[9].mxu1 }
  0xf9   : > { %v4107_v45 = vpop.f32.mrb[10].mxu1 }
  0xfa   : > { %v4812_v46 = vpop.f32.mrb[11].mxu1 }
  0xff   : > { %v4814_v47 = vpop.f32.mrb[12].mxu1 }
 0x100   : > { %v4816_v48 = vpop.f32.mrb[13].mxu1 }
 0x101   : > { %v4818_v49 = vpop.f32.mrb[14].mxu1 }
 0x102   : > { %v4820_v50 = vpop.f32.mrb[15].mxu1 }
 0x107   : > { %v4822_v51 = vpop.f32.mrb[16].mxu1 }
 0x108   : > { %v4824_v52 = vpop.f32.mrb[17].mxu1 }
 0x109   : > { %v4826_v53 = vpop.f32.mrb[18].mxu1 }
 0x10a   : > { %v4828_v54 = vpop.f32.mrb[19].mxu1 }
 0x10f   : > { %v4830_v55 = vpop.f32.mrb[20].mxu1 }
 0x110   : > { %v4832_v56 = vpop.f32.mrb[21].mxu1 }
 0x111   : > { %v4834_v57 = vpop.f32.mrb[22].mxu1 }
 0x112   : > { %v4836_v58 = vpop.f32.mrb[23].mxu1 }
 0x117   : > { %v4838_v59 = vpop.f32.mrb[24].mxu1 }
 0x118   : > { %v4840_v60 = vpop.f32.mrb[25].mxu1 }
 0x119   : > { %v4842_v61 = vpop.f32.mrb[26].mxu1 }
 0x11a   : > { %v4844_v62 = vpop.f32.mrb[27].mxu1 }
 0x11f   : > { %v4846_v63 = vpop.f32.mrb[28].mxu1 }
 0x120   : > { %v4848_v0 = vpop.f32.mrb[29].mxu1 }
 0x121   : > { %v4850_v1 = vpop.f32.mrb[30].mxu1 }
 0x122   : > { %v4852_v2 = vpop.f32.mrb[31].mxu1 }
 0x127   : > { %v4230_v3 = vpop.f32.mrb[0].mxu0 }
 0x128   : > { %v4294_v4 = vadd.f32 %v4230_v3, %v4098_v35  ;;  %v1777_v5 = vpop.f32.mrb[1].mxu0 }
 0x129   : > { %v4295_v6 = vadd.f32 %v1777_v5, %v603_v36  ;;  %v4231_v7 = vpop.f32.mrb[2].mxu0 }
 0x12a   : > { %v4296_v8 = vadd.f32 %v4231_v7, %v4099_v37  ;;  %v1780_v9 = vpop.f32.mrb[3].mxu0  ;;  %v3450_v14 = vmul.f32 0.0, %v4294_v4 }
 0x12b   : > { %v4297_v10 = vadd.f32 %v1780_v9, %v606_v38  ;;  %v3448_v11 = vmul.f32 %v4295_v6, %v4295_v6 }
 0x12c   : > { %v3451_v19 = vmul.f32 0.0, %v4296_v8 }
 0x12d   : > { %v3378_v12 = vadd.f32 %v4297_v10, %v4295_v6  ;;  %v3449_v13 = vmul.f32 %v4297_v10, %v4297_v10 }
 0x12f   : > { %v3512_v15 = vadd.f32 %v3449_v13, %v3448_v11  ;;  %v4234_v16 = vpop.f32.mrb[4].mxu0 }
 0x130   : > { %v4298_v17 = vadd.f32 %v4234_v16, %v4102_v39  ;;  %v1793_v18 = vpop.f32.mrb[5].mxu0 }
 0x131   : > { %v3513_v20 = vadd.f32 %v3512_v15, %v3450_v14  ;;  %v4299_v21 = vadd.f32 %v1793_v18, %v619_v40  ;;  %v4235_v22 = vpop.f32.mrb[6].mxu0 }
 0x132   : > { %v4300_v23 = vadd.f32 %v4235_v22, %v4103_v41  ;;  %v1796_v24 = vpop.f32.mrb[7].mxu0  ;;  %v3454_v32 = vmul.f32 0.0, %v4298_v17 }
 0x133   : > { %v3381_v25 = vadd.f32 %v4299_v21, %v3378_v12  ;;  %v3452_v26 = vmul.f32 %v4299_v21, %v4299_v21  ;;  %v3514_v27 = vadd.f32 %v3513_v20, %v3451_v19  ;;  %v4301_v28 = vadd.f32 %v1796_v24, %v622_v42 }
 0x134   : > { %v3455_v37 = vmul.f32 0.0, %v4300_v23 }
 0x135   : > { %v3515_v29 = vadd.f32 %v3514_v27, %v3452_v26  ;;  %v3382_v30 = vadd.f32 %v4301_v28, %v3381_v25  ;;  %v3453_v31 = vmul.f32 %v4301_v28, %v4301_v28 }
 0x137   : > { %v3516_v33 = vadd.f32 %v3515_v29, %v3453_v31  ;;  %v4238_v34 = vpop.f32.mrb[8].mxu0 }
 0x138   : > { %v4302_v35 = vadd.f32 %v4238_v34, %v4106_v43  ;;  %v1809_v36 = vpop.f32.mrb[9].mxu0 }
 0x139   : > { %v3517_v38 = vadd.f32 %v3516_v33, %v3454_v32  ;;  %v4303_v39 = vadd.f32 %v1809_v36, %v635_v44  ;;  %v4239_v3 = vpop.f32.mrb[10].mxu0 }
 0x13a   : > { %v4304_v40 = vadd.f32 %v4239_v3, %v4107_v45  ;;  %v1812_v4 = vpop.f32.mrb[11].mxu0  ;;  %v3458_v10 = vmul.f32 0.0, %v4302_v35 }
 0x13b   : > { %v3385_v41 = vadd.f32 %v4303_v39, %v3382_v30  ;;  %v3456_v5 = vmul.f32 %v4303_v39, %v4303_v39  ;;  %v3518_v6 = vadd.f32 %v3517_v38, %v3455_v37  ;;  %v4305_v7 = vadd.f32 %v1812_v4, %v4812_v46 }
 0x13c   : > { %v3459_v14 = vmul.f32 0.0, %v4304_v40 }
 0x13d   : > { %v3519_v42 = vadd.f32 %v3518_v6, %v3456_v5  ;;  %v3386_v8 = vadd.f32 %v4305_v7, %v3385_v41  ;;  %v3457_v9 = vmul.f32 %v4305_v7, %v4305_v7 }
 0x13f   : > { %v3520_v11 = vadd.f32 %v3519_v42, %v3457_v9  ;;  %v4242_v12 = vpop.f32.mrb[12].mxu0 }
 0x140   : > { %v4306_v43 = vadd.f32 %v4242_v12, %v4814_v47  ;;  %v1825_v13 = vpop.f32.mrb[13].mxu0 }
 0x141   : > { %v3521_v15 = vadd.f32 %v3520_v11, %v3458_v10  ;;  %v4307_v44 = vadd.f32 %v1825_v13, %v4816_v48  ;;  %v4243_v45 = vpop.f32.mrb[14].mxu0 }
 0x142   : > { %v4308_v16 = vadd.f32 %v4243_v45, %v4818_v49  ;;  %v1828_v17 = vpop.f32.mrb[15].mxu0  ;;  %v3462_v24 = vmul.f32 0.0, %v4306_v43 }
 0x143   : > { %v3389_v18 = vadd.f32 %v4307_v44, %v3386_v8  ;;  %v3460_v19 = vmul.f32 %v4307_v44, %v4307_v44  ;;  %v3522_v46 = vadd.f32 %v3521_v15, %v3459_v14  ;;  %v4309_v20 = vadd.f32 %v1828_v17, %v4820_v50 }
 0x144   : > { %v3463_v28 = vmul.f32 0.0, %v4308_v16 }
 0x145   : > { %v3523_v21 = vadd.f32 %v3522_v46, %v3460_v19  ;;  %v3390_v22 = vadd.f32 %v4309_v20, %v3389_v18  ;;  %v3461_v23 = vmul.f32 %v4309_v20, %v4309_v20 }
 0x147   : > { %v3524_v25 = vadd.f32 %v3523_v21, %v3461_v23  ;;  %v4246_v47 = vpop.f32.mrb[16].mxu0 }
 0x148   : > { %v4310_v26 = vadd.f32 %v4246_v47, %v4822_v51  ;;  %v1841_v27 = vpop.f32.mrb[17].mxu0 }
 0x149   : > { %v3525_v48 = vadd.f32 %v3524_v25, %v3462_v24  ;;  %v4311_v29 = vadd.f32 %v1841_v27, %v4824_v52  ;;  %v4247_v49 = vpop.f32.mrb[18].mxu0 }
 0x14a   : > { %v4312_v30 = vadd.f32 %v4247_v49, %v4826_v53  ;;  %v1844_v31 = vpop.f32.mrb[19].mxu0  ;;  %v3466_v38 = vmul.f32 0.0, %v4310_v26 }
 0x14b   : > { %v3393_v32 = vadd.f32 %v4311_v29, %v3390_v22  ;;  %v3464_v33 = vmul.f32 %v4311_v29, %v4311_v29  ;;  %v3526_v50 = vadd.f32 %v3525_v48, %v3463_v28  ;;  %v4313_v34 = vadd.f32 %v1844_v31, %v4828_v54 }
 0x14c   : > { %v3467_v4 = vmul.f32 0.0, %v4312_v30 }
 0x14d   : > { %v3527_v35 = vadd.f32 %v3526_v50, %v3464_v33  ;;  %v3394_v36 = vadd.f32 %v4313_v34, %v3393_v32  ;;  %v3465_v37 = vmul.f32 %v4313_v34, %v4313_v34 }
 0x14f   : > { %v3528_v39 = vadd.f32 %v3527_v35, %v3465_v37  ;;  %v4250_v51 = vpop.f32.mrb[20].mxu0 }
 0x150   : > { %v4314_v3 = vadd.f32 %v4250_v51, %v4830_v55  ;;  %v1857_v40 = vpop.f32.mrb[21].mxu0 }
 0x151   : > { %v3529_v52 = vadd.f32 %v3528_v39, %v3466_v38  ;;  %v4315_v41 = vadd.f32 %v1857_v40, %v4832_v56  ;;  %v4251_v53 = vpop.f32.mrb[22].mxu0 }
 0x152   : > { %v4316_v5 = vadd.f32 %v4251_v53, %v4834_v57  ;;  %v1860_v6 = vpop.f32.mrb[23].mxu0  ;;  %v3470_v12 = vmul.f32 0.0, %v4314_v3 }
 0x153   : > { %v3397_v7 = vadd.f32 %v4315_v41, %v3394_v36  ;;  %v3468_v42 = vmul.f32 %v4315_v41, %v4315_v41  ;;  %v3530_v54 = vadd.f32 %v3529_v52, %v3467_v4  ;;  %v4317_v8 = vadd.f32 %v1860_v6, %v4836_v58 }
 0x154   : > { %v3471_v15 = vmul.f32 0.0, %v4316_v5 }
 0x155   : > { %v3531_v9 = vadd.f32 %v3530_v54, %v3468_v42  ;;  %v3398_v10 = vadd.f32 %v4317_v8, %v3397_v7  ;;  %v3469_v11 = vmul.f32 %v4317_v8, %v4317_v8 }
 0x157   : > { %v3532_v43 = vadd.f32 %v3531_v9, %v3469_v11  ;;  %v4254_v55 = vpop.f32.mrb[24].mxu0 }
 0x158   : > { %v4318_v13 = vadd.f32 %v4254_v55, %v4838_v59  ;;  %v1873_v14 = vpop.f32.mrb[25].mxu0 }
 0x159   : > { %v3533_v56 = vadd.f32 %v3532_v43, %v3470_v12  ;;  %v4319_v44 = vadd.f32 %v1873_v14, %v4840_v60  ;;  %v4255_v57 = vpop.f32.mrb[26].mxu0 }
 0x15a   : > { %v4320_v45 = vadd.f32 %v4255_v57, %v4842_v61  ;;  %v1876_v16 = vpop.f32.mrb[27].mxu0  ;;  %v3474_v22 = vmul.f32 0.0, %v4318_v13 }
 0x15b   : > { %v3401_v17 = vadd.f32 %v4319_v44, %v3398_v10  ;;  %v3472_v18 = vmul.f32 %v4319_v44, %v4319_v44  ;;  %v3534_v58 = vadd.f32 %v3533_v56, %v3471_v15  ;;  %v4321_v19 = vadd.f32 %v1876_v16, %v4844_v62 }
 0x15c   : > { %v3475_v47 = vmul.f32 0.0, %v4320_v45 }
 0x15d   : > { %v3535_v46 = vadd.f32 %v3534_v58, %v3472_v18  ;;  %v3402_v20 = vadd.f32 %v4321_v19, %v3401_v17  ;;  %v3473_v21 = vmul.f32 %v4321_v19, %v4321_v19 }
 0x15f   : > { %v3536_v23 = vadd.f32 %v3535_v46, %v3473_v21  ;;  %v4258_v59 = vpop.f32.mrb[28].mxu0 }
 0x160   : > { %v4322_v24 = vadd.f32 %v4258_v59, %v4846_v63  ;;  %v1889_v25 = vpop.f32.mrb[29].mxu0 }
 0x161   : > { %v3537_v60 = vadd.f32 %v3536_v23, %v3474_v22  ;;  %v4323_v26 = vadd.f32 %v1889_v25, %v4848_v0  ;;  %v4259_v61 = vpop.f32.mrb[30].mxu0 }
 0x162   : > { %v4324_v27 = vadd.f32 %v4259_v61, %v4850_v1  ;;  %v1892_v28 = vpop.f32.mrb[31].mxu0  ;;  %v3478_v50 = vmul.f32 0.0, %v4322_v24 }
 0x163   : > { %v3405_v48 = vadd.f32 %v4323_v26, %v3402_v20  ;;  %v3476_v29 = vmul.f32 %v4323_v26, %v4323_v26  ;;  %v3538_v62 = vadd.f32 %v3537_v60, %v3475_v47  ;;  %v4325_v49 = vadd.f32 %v1892_v28, %v4852_v2 }
 0x164   : > { %v3479_v38 = vmul.f32 0.0, %v4324_v27 }
 0x165   : > { %v3539_v30 = vadd.f32 %v3538_v62, %v3476_v29  ;;  %v3406_v31 = vadd.f32 %v4325_v49, %v3405_v48  ;;  %v3477_v32 = vmul.f32 %v4325_v49, %v4325_v49 }
 0x167   : > { %v4196_v33 = vpop.f32.mrb[32].mxu1  ;;  %v3540_v63 = vadd.f32 %v3539_v30, %v3477_v32  ;;  %v4262_v34 = vpop.f32.mrb[32].mxu0 }
 0x168   : > { %v1282_v35 = vpop.f32.mrb[33].mxu1  ;;  %v4326_v36 = vadd.f32 %v4262_v34, %v4196_v33  ;;  %v1905_v37 = vpop.f32.mrb[33].mxu0 }
 0x169   : > { %v4197_v0 = vpop.f32.mrb[34].mxu1  ;;  %v3541_v39 = vadd.f32 %v3540_v63, %v3478_v50  ;;  %v4327_v1 = vadd.f32 %v1905_v37, %v1282_v35  ;;  %v4263_v51 = vpop.f32.mrb[34].mxu0 }
 0x16a   : > { %v1285_v3 = vpop.f32.mrb[35].mxu1  ;;  %v4328_v40 = vadd.f32 %v4263_v51, %v4197_v0  ;;  %v1908_v4 = vpop.f32.mrb[35].mxu0  ;;  %v3482_v54 = vmul.f32 0.0, %v4326_v36 }
 0x16b   : > { %v3409_v52 = vadd.f32 %v4327_v1, %v3406_v31  ;;  %v3480_v2 = vmul.f32 %v4327_v1, %v4327_v1  ;;  %v3542_v41 = vadd.f32 %v3541_v39, %v3479_v38  ;;  %v4329_v53 = vadd.f32 %v1908_v4, %v1285_v3 }
 0x16c   : > { %v3483_v55 = vmul.f32 0.0, %v4328_v40 }
 0x16d   : > { %v3543_v5 = vadd.f32 %v3542_v41, %v3480_v2  ;;  %v3410_v6 = vadd.f32 %v4329_v53, %v3409_v52  ;;  %v3481_v7 = vmul.f32 %v4329_v53, %v4329_v53 }
 0x16f   : > { %v4200_v42 = vpop.f32.mrb[36].mxu1  ;;  %v3544_v8 = vadd.f32 %v3543_v5, %v3481_v7  ;;  %v4266_v9 = vpop.f32.mrb[36].mxu0 }
 0x170   : > { %v1298_v10 = vpop.f32.mrb[37].mxu1  ;;  %v4330_v11 = vadd.f32 %v4266_v9, %v4200_v42  ;;  %v1921_v12 = vpop.f32.mrb[37].mxu0 }
 0x171   : > { %v4201_v43 = vpop.f32.mrb[38].mxu1  ;;  %v3545_v13 = vadd.f32 %v3544_v8, %v3482_v54  ;;  %v4331_v14 = vadd.f32 %v1921_v12, %v1298_v10  ;;  %v4267_v15 = vpop.f32.mrb[38].mxu0 }
 0x172   : > { %v1301_v56 = vpop.f32.mrb[39].mxu1  ;;  %v4332_v44 = vadd.f32 %v4267_v15, %v4201_v43  ;;  %v1924_v57 = vpop.f32.mrb[39].mxu0  ;;  %v3486_v21 = vmul.f32 0.0, %v4330_v11 }
 0x173   : > { %v3413_v45 = vadd.f32 %v4331_v14, %v3410_v6  ;;  %v3484_v16 = vmul.f32 %v4331_v14, %v4331_v14  ;;  %v3546_v17 = vadd.f32 %v3545_v13, %v3483_v55  ;;  %v4333_v18 = vadd.f32 %v1924_v57, %v1301_v56 }
 0x174   : > { %v3487_v60 = vmul.f32 0.0, %v4332_v44 }
 0x175   : > { %v3547_v58 = vadd.f32 %v3546_v17, %v3484_v16  ;;  %v3414_v19 = vadd.f32 %v4333_v18, %v3413_v45  ;;  %v3485_v46 = vmul.f32 %v4333_v18, %v4333_v18 }
 0x177   : > { %v4204_v20 = vpop.f32.mrb[40].mxu1  ;;  %v3548_v22 = vadd.f32 %v3547_v58, %v3485_v46  ;;  %v4270_v23 = vpop.f32.mrb[40].mxu0 }
 0x178   : > { %v1314_v59 = vpop.f32.mrb[41].mxu1  ;;  %v4334_v24 = vadd.f32 %v4270_v23, %v4204_v20  ;;  %v1937_v25 = vpop.f32.mrb[41].mxu0 }
 0x179   : > { %v4205_v47 = vpop.f32.mrb[42].mxu1  ;;  %v3549_v26 = vadd.f32 %v3548_v22, %v3486_v21  ;;  %v4335_v61 = vadd.f32 %v1937_v25, %v1314_v59  ;;  %v4271_v27 = vpop.f32.mrb[42].mxu0 }
 0x17a   : > { %v1317_v28 = vpop.f32.mrb[43].mxu1  ;;  %v4336_v48 = vadd.f32 %v4271_v27, %v4205_v47  ;;  %v1940_v29 = vpop.f32.mrb[43].mxu0  ;;  %v3490_v34 = vmul.f32 0.0, %v4334_v24 }
 0x17b   : > { %v3417_v62 = vadd.f32 %v4335_v61, %v3414_v19  ;;  %v3488_v49 = vmul.f32 %v4335_v61, %v4335_v61  ;;  %v3550_v30 = vadd.f32 %v3549_v26, %v3487_v60  ;;  %v4337_v31 = vadd.f32 %v1940_v29, %v1317_v28 }
 0x17c   : > { %v3491_v1 = vmul.f32 0.0, %v4336_v48 }
 0x17d   : > { %v3551_v32 = vadd.f32 %v3550_v30, %v3488_v49  ;;  %v3418_v33 = vadd.f32 %v4337_v31, %v3417_v62  ;;  %v3489_v50 = vmul.f32 %v4337_v31, %v4337_v31 }
 0x17f   : > { %v4208_v63 = vpop.f32.mrb[44].mxu1  ;;  %v3552_v35 = vadd.f32 %v3551_v32, %v3489_v50  ;;  %v4274_v36 = vpop.f32.mrb[44].mxu0 }
 0x180   : > { %v1330_v37 = vpop.f32.mrb[45].mxu1  ;;  %v4338_v0 = vadd.f32 %v4274_v36, %v4208_v63  ;;  %v1953_v38 = vpop.f32.mrb[45].mxu0 }
 0x181   : > { %v4209_v39 = vpop.f32.mrb[46].mxu1  ;;  %v3553_v51 = vadd.f32 %v3552_v35, %v3490_v34  ;;  %v4339_v3 = vadd.f32 %v1953_v38, %v1330_v37  ;;  %v4275_v40 = vpop.f32.mrb[46].mxu0 }
 0x182   : > { %v1333_v4 = vpop.f32.mrb[47].mxu1  ;;  %v4340_v52 = vadd.f32 %v4275_v40, %v4209_v39  ;;  %v1956_v2 = vpop.f32.mrb[47].mxu0  ;;  %v3494_v9 = vmul.f32 0.0, %v4338_v0 }
 0x183   : > { %v3421_v41 = vadd.f32 %v4339_v3, %v3418_v33  ;;  %v3492_v53 = vmul.f32 %v4339_v3, %v4339_v3  ;;  %v3554_v5 = vadd.f32 %v3553_v51, %v3491_v1  ;;  %v4341_v6 = vadd.f32 %v1956_v2, %v1333_v4 }
 0x184   : > { %v3495_v14 = vmul.f32 0.0, %v4340_v52 }
 0x185   : > { %v3555_v7 = vadd.f32 %v3554_v5, %v3492_v53  ;;  %v3422_v42 = vadd.f32 %v4341_v6, %v3421_v41  ;;  %v3493_v54 = vmul.f32 %v4341_v6, %v4341_v6 }
 0x187   : > { %v4212_v8 = vpop.f32.mrb[48].mxu1  ;;  %v3556_v10 = vadd.f32 %v3555_v7, %v3493_v54  ;;  %v4278_v11 = vpop.f32.mrb[48].mxu0 }
 0x188   : > { %v1346_v12 = vpop.f32.mrb[49].mxu1  ;;  %v4342_v43 = vadd.f32 %v4278_v11, %v4212_v8  ;;  %v1969_v55 = vpop.f32.mrb[49].mxu0 }
 0x189   : > { %v4213_v13 = vpop.f32.mrb[50].mxu1  ;;  %v3557_v15 = vadd.f32 %v3556_v10, %v3494_v9  ;;  %v4343_v56 = vadd.f32 %v1969_v55, %v1346_v12  ;;  %v4279_v44 = vpop.f32.mrb[50].mxu0 }
 0x18a   : > { %v1349_v57 = vpop.f32.mrb[51].mxu1  ;;  %v4344_v45 = vadd.f32 %v4279_v44, %v4213_v13  ;;  %v1972_v16 = vpop.f32.mrb[51].mxu0  ;;  %v3498_v23 = vmul.f32 0.0, %v4342_v43 }
 0x18b   : > { %v3425_v17 = vadd.f32 %v4343_v56, %v3422_v42  ;;  %v3496_v18 = vmul.f32 %v4343_v56, %v4343_v56  ;;  %v3558_v58 = vadd.f32 %v3557_v15, %v3495_v14  ;;  %v4345_v19 = vadd.f32 %v1972_v16, %v1349_v57 }
 0x18c   : > { %v3499_v61 = vmul.f32 0.0, %v4344_v45 }
 0x18d   : > { %v3559_v46 = vadd.f32 %v3558_v58, %v3496_v18  ;;  %v3426_v20 = vadd.f32 %v4345_v19, %v3425_v17  ;;  %v3497_v21 = vmul.f32 %v4345_v19, %v4345_v19 }
 0x18f   : > { %v4216_v22 = vpop.f32.mrb[52].mxu1  ;;  %v3560_v59 = vadd.f32 %v3559_v46, %v3497_v21  ;;  %v4282_v24 = vpop.f32.mrb[52].mxu0 }
 0x190   : > { %v1362_v25 = vpop.f32.mrb[53].mxu1  ;;  %v4346_v47 = vadd.f32 %v4282_v24, %v4216_v22  ;;  %v1985_v60 = vpop.f32.mrb[53].mxu0 }
 0x191   : > { %v4217_v26 = vpop.f32.mrb[54].mxu1  ;;  %v3561_v27 = vadd.f32 %v3560_v59, %v3498_v23  ;;  %v4347_v28 = vadd.f32 %v1985_v60, %v1362_v25  ;;  %v4283_v48 = vpop.f32.mrb[54].mxu0 }
 0x192   : > { %v1365_v29 = vpop.f32.mrb[55].mxu1  ;;  %v4348_v62 = vadd.f32 %v4283_v48, %v4217_v26  ;;  %v1988_v49 = vpop.f32.mrb[55].mxu0  ;;  %v3502_v36 = vmul.f32 0.0, %v4346_v47 }
 0x193   : > { %v3429_v30 = vadd.f32 %v4347_v28, %v3426_v20  ;;  %v3500_v31 = vmul.f32 %v4347_v28, %v4347_v28  ;;  %v3562_v32 = vadd.f32 %v3561_v27, %v3499_v61  ;;  %v4349_v33 = vadd.f32 %v1988_v49, %v1365_v29 }
 0x194   : > { %v3503_v3 = vmul.f32 0.0, %v4348_v62 }
 0x195   : > { %v3563_v50 = vadd.f32 %v3562_v32, %v3500_v31  ;;  %v3430_v63 = vadd.f32 %v4349_v33, %v3429_v30  ;;  %v3501_v34 = vmul.f32 %v4349_v33, %v4349_v33 }
 0x197   : > { %v4220_v35 = vpop.f32.mrb[56].mxu1  ;;  %v3564_v37 = vadd.f32 %v3563_v50, %v3501_v34  ;;  %v4286_v0 = vpop.f32.mrb[56].mxu0 }
 0x198   : > { %v1378_v38 = vpop.f32.mrb[57].mxu1  ;;  %v4350_v39 = vadd.f32 %v4286_v0, %v4220_v35  ;;  %v2001_v1 = vpop.f32.mrb[57].mxu0 }
 0x199   : > { %v4221_v51 = vpop.f32.mrb[58].mxu1  ;;  %v3565_v40 = vadd.f32 %v3564_v37, %v3502_v36  ;;  %v4351_v4 = vadd.f32 %v2001_v1, %v1378_v38  ;;  %v4287_v52 = vpop.f32.mrb[58].mxu0 }
 0x19a   : > { %v1381_v2 = vpop.f32.mrb[59].mxu1  ;;  %v4352_v41 = vadd.f32 %v4287_v52, %v4221_v51  ;;  %v2004_v53 = vpop.f32.mrb[59].mxu0  ;;  %v3506_v11 = vmul.f32 0.0, %v4350_v39 }
 0x19b   : > { %v3433_v5 = vadd.f32 %v4351_v4, %v3430_v63  ;;  %v3504_v6 = vmul.f32 %v4351_v4, %v4351_v4  ;;  %v3566_v7 = vadd.f32 %v3565_v40, %v3503_v3  ;;  %v4353_v42 = vadd.f32 %v2004_v53, %v1381_v2 }
 0x19c   : > { %v3507_v56 = vmul.f32 0.0, %v4352_v41 }
 0x19d   : > { %v3567_v54 = vadd.f32 %v3566_v7, %v3504_v6  ;;  %v3434_v8 = vadd.f32 %v4353_v42, %v3433_v5  ;;  %v3505_v9 = vmul.f32 %v4353_v42, %v4353_v42 }
 0x19f   : > { %v4224_v10 = vpop.f32.mrb[60].mxu1  ;;  %v3568_v12 = vadd.f32 %v3567_v54, %v3505_v9  ;;  %v4290_v43 = vpop.f32.mrb[60].mxu0 }
 0x1a0   : > { %v1394_v55 = vpop.f32.mrb[61].mxu1  ;;  %v4354_v13 = vadd.f32 %v4290_v43, %v4224_v10  ;;  %v2017_v14 = vpop.f32.mrb[61].mxu0 }
 0x1a1   : > { %v4225_v15 = vpop.f32.mrb[62].mxu1  ;;  %v3569_v44 = vadd.f32 %v3568_v12, %v3506_v11  ;;  %v4355_v57 = vadd.f32 %v2017_v14, %v1394_v55  ;;  %v4291_v45 = vpop.f32.mrb[62].mxu0 }
 0x1a2   : > { %v1397_v16 = vpop.f32.mrb[63].mxu1  ;;  %v4356_v17 = vadd.f32 %v4291_v45, %v4225_v15  ;;  %v2020_v18 = vpop.f32.mrb[63].mxu0  ;;  %v3510_v59 = vmul.f32 0.0, %v4354_v13 }
 0x1a3   : > { %v3437_v58 = vadd.f32 %v4355_v57, %v3434_v8  ;;  %v3508_v19 = vmul.f32 %v4355_v57, %v4355_v57  ;;  %v3570_v46 = vadd.f32 %v3569_v44, %v3507_v56  ;;  %v4357_v20 = vadd.f32 %v2020_v18, %v1397_v16 }
 0x1a4   : > { %v3511_v47 = vmul.f32 0.0, %v4356_v17 }
 0x1a5   : > { %v3571_v21 = vadd.f32 %v3570_v46, %v3508_v19  ;;  %v3438_v22 = vadd.f32 %v4357_v20, %v3437_v58  ;;  %v3509_v23 = vmul.f32 %v4357_v20, %v4357_v20 }
 0x1a7   : > { %v3441_v24 = vrot.slane %v3438_v22, 4  ;;  %v3572_v25 = vadd.f32 %v3571_v21, %v3509_v23 }
 0x1a9   : > { %v3442_v60 = vadd.f32 %v3441_v24, %v3438_v22  ;;  %v3573_v26 = vadd.f32 %v3572_v25, %v3510_v59 }
 0x1ab   : > { %v3443_v61 = vrot.slane %v3442_v60, 2  ;;  %v3574_v27 = vadd.f32 %v3573_v26, %v3511_v47 }
 0x1ad   : > { %v3444_v28 = vadd.f32 %v3443_v61, %v3442_v60  ;;  %v3575_v48 = vrot.slane %v3574_v27, 4 }
 0x1af   : > { %v3445_v29 = vrot.slane %v3444_v28, 1  ;;  %v3576_v62 = vadd.f32 %v3575_v48, %v3574_v27 }
 0x1b1   : > { %v3446_v49 = vadd.f32 %v3445_v29, %v3444_v28  ;;  %v3577_v30 = vrot.slane %v3576_v62, 2 }
 0x1b3   : > { %3447 = vst [vmem:[%s161_s26] sm:$0x1] %v3446_v49  ;;  %v3578_v31 = vadd.f32 %v3577_v30, %v3576_v62 }
 0x1b5   : > { %v3579_v32 = vrot.slane %v3578_v31, 1 }
 0x1b7   : > { %v3580_v33 = vadd.f32 %v3579_v32, %v3578_v31 }
 0x1b9   : > { %3581 = vst [vmem:[%s161_s26 + $0x1] sm:$0x1] %v3580_v33 }
 0x1ba PF: > { %s12_s11 = sadd.s32 1, %s4568_s11   ;;  %s4891_s9 = smov %s4564_s10 }
 0x1bb   : > { %p9_p5 = scmp.ge.s32.totalorder %s12_s11, 4   ;;  %s4892_s10 = smov %s4894_s12 }
 0x1bd   :  { %11 = sbr.rel (!%p9_p5) target bundleno = 2 (0x2), region = 63 }

</bundles_post_ra>
